<compile_context>
chip_gen: v6e
topology: v6e:2x2x1
jax: 0.10.0
libtpu: 0.0.40
codegen_flags: <defaults>
</compile_context>

<pallas_src>
import functools

import jax
import jax.numpy as jnp
from jax.experimental import pallas as pl
from jax.experimental.pallas import tpu as pltpu


def _layernorm(x, gamma, beta, eps=1e-5):
    mu = jnp.mean(x, axis=-1, keepdims=True)
    var = jnp.mean((x - mu) ** 2, axis=-1, keepdims=True)
    return (x - mu) * jax.lax.rsqrt(var + eps) * gamma + beta


def encoder_layer_kernel(x_ref,
                         wqkv_ref, bqkv_ref, wo_ref, bo_ref,
                         g1_ref, be1_ref,
                         wf1_ref, bf1_ref, wf2_ref, bf2_ref,
                         g2_ref, be2_ref,
                         gf_ref, bef_ref,
                         o_ref,
                         x_st, qkv_st, av_st,
                         *, n_heads):
    """One encoder layer per grid step along axis 1; x carried in VMEM scratch."""
    l = pl.program_id(1)
    n_layers = pl.num_programs(1)

    Bb, N, D = x_ref.shape
    R = Bb * N                      # batch folded into the MXU row dimension
    e = D // n_heads
    f32 = jnp.float32
    bf16 = jnp.bfloat16

    # First layer step: load this batch block into the resident f32 activation.
    @pl.when(l == 0)
    def _():
        x_st[...] = x_ref[...].astype(f32).reshape(R, D)

    x = x_st[...]                                                     # (R, D) f32

    # ---- fused QKV projection (1/sqrt(e) already folded into Wq/bq) ----------
    qkv_st[...] = (jnp.dot(x.astype(bf16), wqkv_ref[0],
                           preferred_element_type=f32) + bqkv_ref[0])  # (R, 3D) f32

    # ---- multi-head softmax attention (attn_mask=None) -----------------------
    # Heads via a short static loop of lane-window loads; merge back via lane-window
    # stores into av_st -> single full-K output projection.  Avoids 4-D transposes.
    for h in range(n_heads):
        q = qkv_st[:, h * e:(h + 1) * e].reshape(Bb, N, e).astype(bf16)
        k = qkv_st[:, D + h * e:D + (h + 1) * e].reshape(Bb, N, e).astype(bf16)
        v = qkv_st[:, 2 * D + h * e:2 * D + (h + 1) * e].reshape(Bb, N, e).astype(bf16)

        s = jax.lax.dot_general(q, k, (((2,), (2,)), ((0,), (0,))),
                                preferred_element_type=f32)            # (Bb, N, N) f32
        s = s - jnp.max(s, axis=-1, keepdims=True)
        p = jnp.exp(s)
        p = p * pl.reciprocal(jnp.sum(p, axis=-1, keepdims=True), approx=True)
        av = jax.lax.dot_general(p.astype(bf16), v, (((2,), (1,)), ((0,), (0,))),
                                 preferred_element_type=f32)           # (Bb, N, e) f32
        av_st[:, h * e:(h + 1) * e] = av.reshape(R, e)

    attn = (jnp.dot(av_st[...].astype(bf16), wo_ref[0],
                    preferred_element_type=f32) + bo_ref[0])           # (R, D) f32

    # ---- residual + norm1 (dropout = identity at inference) ------------------
    x1 = _layernorm(x + attn, g1_ref[0], be1_ref[0])

    # ---- FFN: Conv1d(kernel_size=1) == pointwise linear, relu ----------------
    y = jnp.dot(x1.astype(bf16), wf1_ref[0], preferred_element_type=f32) + bf1_ref[0]
    y = jnp.maximum(y, 0.0)
    y = jnp.dot(y.astype(bf16), wf2_ref[0], preferred_element_type=f32) + bf2_ref[0]

    # ---- residual + norm2 -> carried activation for the next layer step ------
    x_new = _layernorm(x1 + y, g2_ref[0], be2_ref[0])
    x_st[...] = x_new

    # Last layer step: fused final Encoder LayerNorm + write-back.
    @pl.when(l == n_layers - 1)
    def _():
        o_ref[...] = (_layernorm(x_new, gf_ref[...], bef_ref[...])
                      .reshape(Bb, N, D).astype(o_ref.dtype))


def encoder_forward(x, layer_params, norm_params, n_heads,
                    attn_mask=None, tau=None, delta=None,
                    batch_block=None, weight_dtype=jnp.bfloat16):
    """iTransformer Encoder: conv_layers is None -> simple stacked-attention path."""
    # TODO(synk): attn_mask / tau / delta (de-stationary attention hooks) are not
    # supported in the fused kernel; iTransformer's encoder passes None for all three.
    del attn_mask, tau, delta

    B, N, D = x.shape
    L = len(layer_params)
    F_ = layer_params[0]["wf1"].shape[1]
    H = n_heads
    e = D // H
    scale = 1.0 / (e ** 0.5)
    f32 = jnp.float32

    if batch_block is None:
        # Single TensorCore (v5e/v6e): keep the whole batch in one grid step so every
        # projection/FFN matmul sees B*N MXU rows.  Split 2-way only when each half
        # still supplies >= 256 rows (worthwhile for the v7x megacore).
        if B % 2 == 0 and (B // 2) * N >= 256:
            batch_block = B // 2
        else:
            batch_block = B
    assert B % batch_block == 0
    grid = (B // batch_block, L)

    # Per-layer weights stacked along a leading layer axis (streamed one layer per grid
    # step).  QKV fused; 1/sqrt(e) folded into Wq/bq; matmul weights in bf16.
    wqkv = jnp.stack([jnp.concatenate([p["wq"] * scale, p["wk"], p["wv"]], axis=1)
                      for p in layer_params]).astype(weight_dtype)          # (L, D, 3D)
    bqkv = jnp.stack([jnp.concatenate([p["bq"] * scale, p["bk"], p["bv"]], axis=1)
                      for p in layer_params]).astype(f32)                   # (L, 1, 3D)
    wo = jnp.stack([p["wo"] for p in layer_params]).astype(weight_dtype)    # (L, D, D)
    bo = jnp.stack([p["bo"] for p in layer_params]).astype(f32)             # (L, 1, D)
    g1 = jnp.stack([p["g1"] for p in layer_params]).astype(f32)
    be1 = jnp.stack([p["be1"] for p in layer_params]).astype(f32)
    wf1 = jnp.stack([p["wf1"] for p in layer_params]).astype(weight_dtype)  # (L, D, F)
    bf1 = jnp.stack([p["bf1"] for p in layer_params]).astype(f32)           # (L, 1, F)
    wf2 = jnp.stack([p["wf2"] for p in layer_params]).astype(weight_dtype)  # (L, F, D)
    bf2 = jnp.stack([p["bf2"] for p in layer_params]).astype(f32)           # (L, 1, D)
    g2 = jnp.stack([p["g2"] for p in layer_params]).astype(f32)
    be2 = jnp.stack([p["be2"] for p in layer_params]).astype(f32)
    gf = norm_params["gamma"].astype(f32)                                   # (1, D)
    bef = norm_params["beta"].astype(f32)                                   # (1, D)

    def layer_spec(shape):
        # One layer's slice per grid step; block index follows the layer grid axis.
        return pl.BlockSpec((1,) + tuple(shape[1:]),
                            lambda b, l: (l,) + (0,) * (len(shape) - 1))

    def const_spec(shape):
        return pl.BlockSpec(tuple(shape), lambda b, l: (0,) * len(shape))

    in_specs = [
        pl.BlockSpec((batch_block, N, D), lambda b, l: (b, 0, 0)),   # x (batch block)
        layer_spec(wqkv.shape), layer_spec(bqkv.shape),              # fused QKV W, b
        layer_spec(wo.shape), layer_spec(bo.shape),                  # out-proj W, b
        layer_spec(g1.shape), layer_spec(be1.shape),                 # norm1 gamma, beta
        layer_spec(wf1.shape), layer_spec(bf1.shape),                # ffn conv1 W, b
        layer_spec(wf2.shape), layer_spec(bf2.shape),                # ffn conv2 W, b
        layer_spec(g2.shape), layer_spec(be2.shape),                 # norm2 gamma, beta
        const_spec(gf.shape), const_spec(bef.shape),                 # final norm gamma, beta
    ]

    R = batch_block * N
    scratch_shapes = [
        pltpu.VMEM((R, D), f32),        # resident activation x, carried across layer steps
        pltpu.VMEM((R, 3 * D), f32),    # fused QKV activations
        pltpu.VMEM((R, D), f32),        # per-head attention outputs merged along lanes
    ]

    # Explicit scoped-VMEM budget: ~2 streamed layers of bf16 weights + f32 activations
    # and intermediates, with headroom; capped to stay inside v7x's 64 MiB per-core VMEM.
    wbytes = jnp.dtype(weight_dtype).itemsize
    per_layer_weights = wbytes * (D * 3 * D + D * D + D * F_ + F_ * D)
    per_layer_small = 4 * (3 * D + 5 * D + F_)
    weight_vmem = 2 * (per_layer_weights + per_layer_small)          # double-buffered stream
    act_vmem = 4 * R * (3 * D          # x scratch + in/out blocks
                        + 3 * D        # qkv scratch
                        + D            # av scratch
                        + F_           # ffn hidden
                        + 4 * D)       # misc live f32 temporaries
    vmem_limit = int(min(56 * 2 ** 20,
                         max(32 * 2 ** 20, int(1.5 * (weight_vmem + act_vmem)))))

    kernel = functools.partial(encoder_layer_kernel, n_heads=H)

    out = pl.pallas_call(
        kernel,
        out_shape=jax.ShapeDtypeStruct((B, N, D), x.dtype),
        grid=grid,
        in_specs=in_specs,
        out_specs=pl.BlockSpec((batch_block, N, D), lambda b, l: (b, 0, 0)),
        scratch_shapes=scratch_shapes,
        compiler_params=pltpu.CompilerParams(
            dimension_semantics=("parallel", "arbitrary"),
            vmem_limit_bytes=vmem_limit),
    )(x, wqkv, bqkv, wo, bo, g1, be1, wf1, bf1, wf2, bf2, g2, be2, gf, bef)

    # output_attention=False -> FullAttention returns None per layer.
    return out, [None] * L


def init_layer_params(key, d_model, d_ff):
    ks = jax.random.split(key, 6)
    std = 0.02

    def w(k, shape):
        return jax.random.normal(k, shape, dtype=jnp.float32) * std

    return {
        "wq": w(ks[0], (d_model, d_model)), "bq": jnp.zeros((1, d_model), jnp.float32),
        "wk": w(ks[1], (d_model, d_model)), "bk": jnp.zeros((1, d_model), jnp.float32),
        "wv": w(ks[2], (d_model, d_model)), "bv": jnp.zeros((1, d_model), jnp.float32),
        "wo": w(ks[3], (d_model, d_model)), "bo": jnp.zeros((1, d_model), jnp.float32),
        "g1": jnp.ones((1, d_model), jnp.float32), "be1": jnp.zeros((1, d_model), jnp.float32),
        "wf1": w(ks[4], (d_model, d_ff)), "bf1": jnp.zeros((1, d_ff), jnp.float32),
        "wf2": w(ks[5], (d_ff, d_model)), "bf2": jnp.zeros((1, d_model), jnp.float32),
        "g2": jnp.ones((1, d_model), jnp.float32), "be2": jnp.zeros((1, d_model), jnp.float32),
    }


if __name__ == "__main__":
    B, N, D, H, D_FF, N_LAYERS = 2, 16, 128, 4, 128, 2

    key = jax.random.PRNGKey(0)
    kx, *klayers = jax.random.split(key, N_LAYERS + 1)

    x = jax.random.normal(kx, (B, N, D), dtype=jnp.float32)
    layer_params = [init_layer_params(k, D, D_FF) for k in klayers]
    norm_params = {"gamma": jnp.ones((1, D), jnp.float32),
                   "beta": jnp.zeros((1, D), jnp.float32)}

    out, attns = encoder_forward(x, layer_params, norm_params, n_heads=H)
    out = jax.block_until_ready(out)

    assert out.shape == (B, N, D)
    assert bool(jnp.all(jnp.isfinite(out)))
    assert len(attns) == N_LAYERS and all(a is None for a in attns)
    print("KERNEL_OK")
</pallas_src>

<mosaic_0001>
module attributes {stable_mosaic.version = 11 : i64} {
  func.func @encoder_layer_kernel(%arg0: i32, %arg1: i32, %arg2: memref<2x16x128xf32, #tpu.memory_space<vmem>>, %arg3: memref<1x128x384xbf16, #tpu.memory_space<vmem>>, %arg4: memref<1x1x384xf32, #tpu.memory_space<vmem>>, %arg5: memref<1x128x128xbf16, #tpu.memory_space<vmem>>, %arg6: memref<1x1x128xf32, #tpu.memory_space<vmem>>, %arg7: memref<1x1x128xf32, #tpu.memory_space<vmem>>, %arg8: memref<1x1x128xf32, #tpu.memory_space<vmem>>, %arg9: memref<1x128x128xbf16, #tpu.memory_space<vmem>>, %arg10: memref<1x1x128xf32, #tpu.memory_space<vmem>>, %arg11: memref<1x128x128xbf16, #tpu.memory_space<vmem>>, %arg12: memref<1x1x128xf32, #tpu.memory_space<vmem>>, %arg13: memref<1x1x128xf32, #tpu.memory_space<vmem>>, %arg14: memref<1x1x128xf32, #tpu.memory_space<vmem>>, %arg15: memref<1x128xf32, #tpu.memory_space<vmem>>, %arg16: memref<1x128xf32, #tpu.memory_space<vmem>>, %arg17: memref<2x16x128xf32, #tpu.memory_space<vmem>>, %arg18: memref<32x128xf32, #tpu.memory_space<vmem>>, %arg19: memref<32x384xf32, #tpu.memory_space<vmem>>, %arg20: memref<32x128xf32, #tpu.memory_space<vmem>>) attributes {dimension_semantics = [#tpu.dimension_semantics<parallel>, #tpu.dimension_semantics<arbitrary>], iteration_bounds = array<i64: 1, 2>, scalar_prefetch = 0 : i64, scratch_operands = 3 : i64, tpu.core_type = #tpu.core_type<tc>, window_params = [{transform_indices = @transform_0, window_bounds = array<i64: 2, 16, 128>}, {transform_indices = @transform_1, window_bounds = array<i64: 1, 128, 384>}, {transform_indices = @transform_2, window_bounds = array<i64: 1, 1, 384>}, {transform_indices = @transform_3, window_bounds = array<i64: 1, 128, 128>}, {transform_indices = @transform_4, window_bounds = array<i64: 1, 1, 128>}, {transform_indices = @transform_5, window_bounds = array<i64: 1, 1, 128>}, {transform_indices = @transform_6, window_bounds = array<i64: 1, 1, 128>}, {transform_indices = @transform_7, window_bounds = array<i64: 1, 128, 128>}, {transform_indices = @transform_8, window_bounds = array<i64: 1, 1, 128>}, {transform_indices = @transform_9, window_bounds = array<i64: 1, 128, 128>}, {transform_indices = @transform_10, window_bounds = array<i64: 1, 1, 128>}, {transform_indices = @transform_11, window_bounds = array<i64: 1, 1, 128>}, {transform_indices = @transform_12, window_bounds = array<i64: 1, 1, 128>}, {pipeline_mode = #tpu.pipeline_mode<synchronous>, transform_indices = @transform_13, window_bounds = array<i64: 1, 128>}, {pipeline_mode = #tpu.pipeline_mode<synchronous>, transform_indices = @transform_14, window_bounds = array<i64: 1, 128>}, {transform_indices = @transform_15, window_bounds = array<i64: 2, 16, 128>}]} {
    %c0_i32 = arith.constant 0 : i32
    %0 = arith.cmpi eq, %arg1, %c0_i32 : i32
    %1 = arith.extui %0 : i1 to i32
    %c0_i32_0 = arith.constant 0 : i32
    %2 = arith.cmpi ne, %1, %c0_i32_0 : i32
    scf.if %2 {
      %c0_96 = arith.constant 0 : index
      %c0_97 = arith.constant 0 : index
      %c0_98 = arith.constant 0 : index
      %194 = vector.load %arg2[%c0_96, %c0_97, %c0_98] : memref<2x16x128xf32, #tpu.memory_space<vmem>>, vector<2x16x128xf32>
      %195 = vector.shape_cast %194 : vector<2x16x128xf32> to vector<32x128xf32>
      %c0_99 = arith.constant 0 : index
      %c0_100 = arith.constant 0 : index
      %196 = vector.load %arg18[%c0_99, %c0_100] : memref<32x128xf32, #tpu.memory_space<vmem>>, vector<32x128xf32>
      tpu.vector_store %arg18[%c0_99, %c0_100], %195 {strides = array<i32>} : memref<32x128xf32, #tpu.memory_space<vmem>>, vector<32x128xf32>,
    } else {
    }
    %c0 = arith.constant 0 : index
    %c0_1 = arith.constant 0 : index
    %3 = vector.load %arg18[%c0, %c0_1] : memref<32x128xf32, #tpu.memory_space<vmem>>, vector<32x128xf32>
    %4 = arith.truncf %3 : vector<32x128xf32> to vector<32x128xbf16>
    %c0_2 = arith.constant 0 : index
    %c0_3 = arith.constant 0 : index
    %c0_4 = arith.constant 0 : index
    %5 = vector.load %arg3[%c0_2, %c0_3, %c0_4] : memref<1x128x384xbf16, #tpu.memory_space<vmem>>, vector<1x128x384xbf16>
    %6 = vector.shape_cast %5 : vector<1x128x384xbf16> to vector<128x384xbf16>
    %cst = arith.constant dense<0.000000e+00> : vector<32x384xf32>
    %7 = tpu.matmul %4, %6, %cst {dimension_numbers = #tpu.dot_dimension_numbers<[1], [0], [0], [1], [0, 0, 1, 1], [], []>} : vector<32x128xbf16>, vector<128x384xbf16>, vector<32x384xf32> -> vector<32x384xf32>
    %c0_5 = arith.constant 0 : index
    %c0_6 = arith.constant 0 : index
    %c0_7 = arith.constant 0 : index
    %8 = vector.load %arg4[%c0_5, %c0_6, %c0_7] : memref<1x1x384xf32, #tpu.memory_space<vmem>>, vector<1x1x384xf32>
    %9 = vector.shape_cast %8 : vector<1x1x384xf32> to vector<1x384xf32>
    %10 = vector.broadcast %9 : vector<1x384xf32> to vector<32x384xf32>
    %11 = arith.addf %7, %10 : vector<32x384xf32>
    %c0_8 = arith.constant 0 : index
    %c0_9 = arith.constant 0 : index
    %12 = vector.load %arg19[%c0_8, %c0_9] : memref<32x384xf32, #tpu.memory_space<vmem>>, vector<32x384xf32>
    tpu.vector_store %arg19[%c0_8, %c0_9], %11 {strides = array<i32>} : memref<32x384xf32, #tpu.memory_space<vmem>>, vector<32x384xf32>,
    %c0_10 = arith.constant 0 : index
    %c0_11 = arith.constant 0 : index
    %13 = vector.load %arg19[%c0_10, %c0_11] : memref<32x384xf32, #tpu.memory_space<vmem>>, vector<32x32xf32>
    %14 = vector.shape_cast %13 : vector<32x32xf32> to vector<2x16x32xf32>
    %15 = arith.truncf %14 : vector<2x16x32xf32> to vector<2x16x32xbf16>
    %c0_12 = arith.constant 0 : index
    %c128 = arith.constant 128 : index
    %16 = vector.load %arg19[%c0_12, %c128] : memref<32x384xf32, #tpu.memory_space<vmem>>, vector<32x32xf32>
    %17 = vector.shape_cast %16 : vector<32x32xf32> to vector<2x16x32xf32>
    %18 = arith.truncf %17 : vector<2x16x32xf32> to vector<2x16x32xbf16>
    %c0_13 = arith.constant 0 : index
    %c256 = arith.constant 256 : index
    %19 = vector.load %arg19[%c0_13, %c256] : memref<32x384xf32, #tpu.memory_space<vmem>>, vector<32x32xf32>
    %20 = vector.shape_cast %19 : vector<32x32xf32> to vector<2x16x32xf32>
    %21 = arith.truncf %20 : vector<2x16x32xf32> to vector<2x16x32xbf16>
    %cst_14 = arith.constant dense<0.000000e+00> : vector<2x16x16xf32>
    %22 = tpu.matmul %15, %18, %cst_14 {dimension_numbers = #tpu.dot_dimension_numbers<[2], [2], [1], [1], [0, 0, 0, 1, 1, 1], [0], [0]>} : vector<2x16x32xbf16>, vector<2x16x32xbf16>, vector<2x16x16xf32> -> vector<2x16x16xf32>
    %cst_15 = arith.constant dense<0xFF800000> : vector<2x16xf32>
    %23 = vector.multi_reduction <maximumf>, %22, %cst_15 [2] : vector<2x16x16xf32> to vector<2x16xf32>
    %24 = vector.shape_cast %23 : vector<2x16xf32> to vector<2x16x1xf32>
    %25 = vector.broadcast %24 : vector<2x16x1xf32> to vector<2x16x16xf32>
    %26 = arith.subf %22, %25 : vector<2x16x16xf32>
    %27 = math.exp %26 : vector<2x16x16xf32>
    %cst_16 = arith.constant dense<0.000000e+00> : vector<2x16xf32>
    %28 = vector.multi_reduction <add>, %27, %cst_16 [2] : vector<2x16x16xf32> to vector<2x16xf32>
    %29 = vector.shape_cast %28 : vector<2x16xf32> to vector<2x16x1xf32>
    %30 = tpu.reciprocal %29 {approx = true} : vector<2x16x1xf32> -> vector<2x16x1xf32>
    %31 = vector.broadcast %30 : vector<2x16x1xf32> to vector<2x16x16xf32>
    %32 = arith.mulf %27, %31 : vector<2x16x16xf32>
    %33 = arith.truncf %32 : vector<2x16x16xf32> to vector<2x16x16xbf16>
    %cst_17 = arith.constant dense<0.000000e+00> : vector<2x16x32xf32>
    %34 = tpu.matmul %33, %21, %cst_17 {dimension_numbers = #tpu.dot_dimension_numbers<[2], [1], [1], [2], [0, 0, 0, 1, 1, 2], [0], [0]>} : vector<2x16x16xbf16>, vector<2x16x32xbf16>, vector<2x16x32xf32> -> vector<2x16x32xf32>
    %35 = vector.shape_cast %34 : vector<2x16x32xf32> to vector<32x32xf32>
    %c0_18 = arith.constant 0 : index
    %c0_19 = arith.constant 0 : index
    %36 = vector.load %arg20[%c0_18, %c0_19] : memref<32x128xf32, #tpu.memory_space<vmem>>, vector<32x32xf32>
    tpu.vector_store %arg20[%c0_18, %c0_19], %35 {strides = array<i32>} : memref<32x128xf32, #tpu.memory_space<vmem>>, vector<32x32xf32>,
    %c0_20 = arith.constant 0 : index
    %c32 = arith.constant 32 : index
    %37 = vector.load %arg19[%c0_20, %c32] : memref<32x384xf32, #tpu.memory_space<vmem>>, vector<32x32xf32>
    %38 = vector.shape_cast %37 : vector<32x32xf32> to vector<2x16x32xf32>
    %39 = arith.truncf %38 : vector<2x16x32xf32> to vector<2x16x32xbf16>
    %c0_21 = arith.constant 0 : index
    %c160 = arith.constant 160 : index
    %40 = vector.load %arg19[%c0_21, %c160] : memref<32x384xf32, #tpu.memory_space<vmem>>, vector<32x32xf32>
    %41 = vector.shape_cast %40 : vector<32x32xf32> to vector<2x16x32xf32>
    %42 = arith.truncf %41 : vector<2x16x32xf32> to vector<2x16x32xbf16>
    %c0_22 = arith.constant 0 : index
    %c288 = arith.constant 288 : index
    %43 = vector.load %arg19[%c0_22, %c288] : memref<32x384xf32, #tpu.memory_space<vmem>>, vector<32x32xf32>
    %44 = vector.shape_cast %43 : vector<32x32xf32> to vector<2x16x32xf32>
    %45 = arith.truncf %44 : vector<2x16x32xf32> to vector<2x16x32xbf16>
    %cst_23 = arith.constant dense<0.000000e+00> : vector<2x16x16xf32>
    %46 = tpu.matmul %39, %42, %cst_23 {dimension_numbers = #tpu.dot_dimension_numbers<[2], [2], [1], [1], [0, 0, 0, 1, 1, 1], [0], [0]>} : vector<2x16x32xbf16>, vector<2x16x32xbf16>, vector<2x16x16xf32> -> vector<2x16x16xf32>
    %cst_24 = arith.constant dense<0xFF800000> : vector<2x16xf32>
    %47 = vector.multi_reduction <maximumf>, %46, %cst_24 [2] : vector<2x16x16xf32> to vector<2x16xf32>
    %48 = vector.shape_cast %47 : vector<2x16xf32> to vector<2x16x1xf32>
    %49 = vector.broadcast %48 : vector<2x16x1xf32> to vector<2x16x16xf32>
    %50 = arith.subf %46, %49 : vector<2x16x16xf32>
    %51 = math.exp %50 : vector<2x16x16xf32>
    %cst_25 = arith.constant dense<0.000000e+00> : vector<2x16xf32>
    %52 = vector.multi_reduction <add>, %51, %cst_25 [2] : vector<2x16x16xf32> to vector<2x16xf32>
    %53 = vector.shape_cast %52 : vector<2x16xf32> to vector<2x16x1xf32>
    %54 = tpu.reciprocal %53 {approx = true} : vector<2x16x1xf32> -> vector<2x16x1xf32>
    %55 = vector.broadcast %54 : vector<2x16x1xf32> to vector<2x16x16xf32>
    %56 = arith.mulf %51, %55 : vector<2x16x16xf32>
    %57 = arith.truncf %56 : vector<2x16x16xf32> to vector<2x16x16xbf16>
    %cst_26 = arith.constant dense<0.000000e+00> : vector<2x16x32xf32>
    %58 = tpu.matmul %57, %45, %cst_26 {dimension_numbers = #tpu.dot_dimension_numbers<[2], [1], [1], [2], [0, 0, 0, 1, 1, 2], [0], [0]>} : vector<2x16x16xbf16>, vector<2x16x32xbf16>, vector<2x16x32xf32> -> vector<2x16x32xf32>
    %59 = vector.shape_cast %58 : vector<2x16x32xf32> to vector<32x32xf32>
    %c0_27 = arith.constant 0 : index
    %c32_28 = arith.constant 32 : index
    %60 = vector.load %arg20[%c0_27, %c32_28] : memref<32x128xf32, #tpu.memory_space<vmem>>, vector<32x32xf32>
    tpu.vector_store %arg20[%c0_27, %c32_28], %59 {strides = array<i32>} : memref<32x128xf32, #tpu.memory_space<vmem>>, vector<32x32xf32>,
    %c0_29 = arith.constant 0 : index
    %c64 = arith.constant 64 : index
    %61 = vector.load %arg19[%c0_29, %c64] : memref<32x384xf32, #tpu.memory_space<vmem>>, vector<32x32xf32>
    %62 = vector.shape_cast %61 : vector<32x32xf32> to vector<2x16x32xf32>
    %63 = arith.truncf %62 : vector<2x16x32xf32> to vector<2x16x32xbf16>
    %c0_30 = arith.constant 0 : index
    %c192 = arith.constant 192 : index
    %64 = vector.load %arg19[%c0_30, %c192] : memref<32x384xf32, #tpu.memory_space<vmem>>, vector<32x32xf32>
    %65 = vector.shape_cast %64 : vector<32x32xf32> to vector<2x16x32xf32>
    %66 = arith.truncf %65 : vector<2x16x32xf32> to vector<2x16x32xbf16>
    %c0_31 = arith.constant 0 : index
    %c320 = arith.constant 320 : index
    %67 = vector.load %arg19[%c0_31, %c320] : memref<32x384xf32, #tpu.memory_space<vmem>>, vector<32x32xf32>
    %68 = vector.shape_cast %67 : vector<32x32xf32> to vector<2x16x32xf32>
    %69 = arith.truncf %68 : vector<2x16x32xf32> to vector<2x16x32xbf16>
    %cst_32 = arith.constant dense<0.000000e+00> : vector<2x16x16xf32>
    %70 = tpu.matmul %63, %66, %cst_32 {dimension_numbers = #tpu.dot_dimension_numbers<[2], [2], [1], [1], [0, 0, 0, 1, 1, 1], [0], [0]>} : vector<2x16x32xbf16>, vector<2x16x32xbf16>, vector<2x16x16xf32> -> vector<2x16x16xf32>
    %cst_33 = arith.constant dense<0xFF800000> : vector<2x16xf32>
    %71 = vector.multi_reduction <maximumf>, %70, %cst_33 [2] : vector<2x16x16xf32> to vector<2x16xf32>
    %72 = vector.shape_cast %71 : vector<2x16xf32> to vector<2x16x1xf32>
    %73 = vector.broadcast %72 : vector<2x16x1xf32> to vector<2x16x16xf32>
    %74 = arith.subf %70, %73 : vector<2x16x16xf32>
    %75 = math.exp %74 : vector<2x16x16xf32>
    %cst_34 = arith.constant dense<0.000000e+00> : vector<2x16xf32>
    %76 = vector.multi_reduction <add>, %75, %cst_34 [2] : vector<2x16x16xf32> to vector<2x16xf32>
    %77 = vector.shape_cast %76 : vector<2x16xf32> to vector<2x16x1xf32>
    %78 = tpu.reciprocal %77 {approx = true} : vector<2x16x1xf32> -> vector<2x16x1xf32>
    %79 = vector.broadcast %78 : vector<2x16x1xf32> to vector<2x16x16xf32>
    %80 = arith.mulf %75, %79 : vector<2x16x16xf32>
    %81 = arith.truncf %80 : vector<2x16x16xf32> to vector<2x16x16xbf16>
    %cst_35 = arith.constant dense<0.000000e+00> : vector<2x16x32xf32>
    %82 = tpu.matmul %81, %69, %cst_35 {dimension_numbers = #tpu.dot_dimension_numbers<[2], [1], [1], [2], [0, 0, 0, 1, 1, 2], [0], [0]>} : vector<2x16x16xbf16>, vector<2x16x32xbf16>, vector<2x16x32xf32> -> vector<2x16x32xf32>
    %83 = vector.shape_cast %82 : vector<2x16x32xf32> to vector<32x32xf32>
    %c0_36 = arith.constant 0 : index
    %c64_37 = arith.constant 64 : index
    %84 = vector.load %arg20[%c0_36, %c64_37] : memref<32x128xf32, #tpu.memory_space<vmem>>, vector<32x32xf32>
    tpu.vector_store %arg20[%c0_36, %c64_37], %83 {strides = array<i32>} : memref<32x128xf32, #tpu.memory_space<vmem>>, vector<32x32xf32>,
    %c0_38 = arith.constant 0 : index
    %c96 = arith.constant 96 : index
    %85 = vector.load %arg19[%c0_38, %c96] : memref<32x384xf32, #tpu.memory_space<vmem>>, vector<32x32xf32>
    %86 = vector.shape_cast %85 : vector<32x32xf32> to vector<2x16x32xf32>
    %87 = arith.truncf %86 : vector<2x16x32xf32> to vector<2x16x32xbf16>
    %c0_39 = arith.constant 0 : index
    %c224 = arith.constant 224 : index
    %88 = vector.load %arg19[%c0_39, %c224] : memref<32x384xf32, #tpu.memory_space<vmem>>, vector<32x32xf32>
    %89 = vector.shape_cast %88 : vector<32x32xf32> to vector<2x16x32xf32>
    %90 = arith.truncf %89 : vector<2x16x32xf32> to vector<2x16x32xbf16>
    %c0_40 = arith.constant 0 : index
    %c352 = arith.constant 352 : index
    %91 = vector.load %arg19[%c0_40, %c352] : memref<32x384xf32, #tpu.memory_space<vmem>>, vector<32x32xf32>
    %92 = vector.shape_cast %91 : vector<32x32xf32> to vector<2x16x32xf32>
    %93 = arith.truncf %92 : vector<2x16x32xf32> to vector<2x16x32xbf16>
    %cst_41 = arith.constant dense<0.000000e+00> : vector<2x16x16xf32>
    %94 = tpu.matmul %87, %90, %cst_41 {dimension_numbers = #tpu.dot_dimension_numbers<[2], [2], [1], [1], [0, 0, 0, 1, 1, 1], [0], [0]>} : vector<2x16x32xbf16>, vector<2x16x32xbf16>, vector<2x16x16xf32> -> vector<2x16x16xf32>
    %cst_42 = arith.constant dense<0xFF800000> : vector<2x16xf32>
    %95 = vector.multi_reduction <maximumf>, %94, %cst_42 [2] : vector<2x16x16xf32> to vector<2x16xf32>
    %96 = vector.shape_cast %95 : vector<2x16xf32> to vector<2x16x1xf32>
    %97 = vector.broadcast %96 : vector<2x16x1xf32> to vector<2x16x16xf32>
    %98 = arith.subf %94, %97 : vector<2x16x16xf32>
    %99 = math.exp %98 : vector<2x16x16xf32>
    %cst_43 = arith.constant dense<0.000000e+00> : vector<2x16xf32>
    %100 = vector.multi_reduction <add>, %99, %cst_43 [2] : vector<2x16x16xf32> to vector<2x16xf32>
    %101 = vector.shape_cast %100 : vector<2x16xf32> to vector<2x16x1xf32>
    %102 = tpu.reciprocal %101 {approx = true} : vector<2x16x1xf32> -> vector<2x16x1xf32>
    %103 = vector.broadcast %102 : vector<2x16x1xf32> to vector<2x16x16xf32>
    %104 = arith.mulf %99, %103 : vector<2x16x16xf32>
    %105 = arith.truncf %104 : vector<2x16x16xf32> to vector<2x16x16xbf16>
    %cst_44 = arith.constant dense<0.000000e+00> : vector<2x16x32xf32>
    %106 = tpu.matmul %105, %93, %cst_44 {dimension_numbers = #tpu.dot_dimension_numbers<[2], [1], [1], [2], [0, 0, 0, 1, 1, 2], [0], [0]>} : vector<2x16x16xbf16>, vector<2x16x32xbf16>, vector<2x16x32xf32> -> vector<2x16x32xf32>
    %107 = vector.shape_cast %106 : vector<2x16x32xf32> to vector<32x32xf32>
    %c0_45 = arith.constant 0 : index
    %c96_46 = arith.constant 96 : index
    %108 = vector.load %arg20[%c0_45, %c96_46] : memref<32x128xf32, #tpu.memory_space<vmem>>, vector<32x32xf32>
    tpu.vector_store %arg20[%c0_45, %c96_46], %107 {strides = array<i32>} : memref<32x128xf32, #tpu.memory_space<vmem>>, vector<32x32xf32>,
    %c0_47 = arith.constant 0 : index
    %c0_48 = arith.constant 0 : index
    %109 = vector.load %arg20[%c0_47, %c0_48] : memref<32x128xf32, #tpu.memory_space<vmem>>, vector<32x128xf32>
    %110 = arith.truncf %109 : vector<32x128xf32> to vector<32x128xbf16>
    %c0_49 = arith.constant 0 : index
    %c0_50 = arith.constant 0 : index
    %c0_51 = arith.constant 0 : index
    %111 = vector.load %arg5[%c0_49, %c0_50, %c0_51] : memref<1x128x128xbf16, #tpu.memory_space<vmem>>, vector<1x128x128xbf16>
    %112 = vector.shape_cast %111 : vector<1x128x128xbf16> to vector<128x128xbf16>
    %cst_52 = arith.constant dense<0.000000e+00> : vector<32x128xf32>
    %113 = tpu.matmul %110, %112, %cst_52 {dimension_numbers = #tpu.dot_dimension_numbers<[1], [0], [0], [1], [0, 0, 1, 1], [], []>} : vector<32x128xbf16>, vector<128x128xbf16>, vector<32x128xf32> -> vector<32x128xf32>
    %c0_53 = arith.constant 0 : index
    %c0_54 = arith.constant 0 : index
    %c0_55 = arith.constant 0 : index
    %114 = vector.load %arg6[%c0_53, %c0_54, %c0_55] : memref<1x1x128xf32, #tpu.memory_space<vmem>>, vector<1x1x128xf32>
    %115 = vector.shape_cast %114 : vector<1x1x128xf32> to vector<1x128xf32>
    %116 = vector.broadcast %115 : vector<1x128xf32> to vector<32x128xf32>
    %117 = arith.addf %113, %116 : vector<32x128xf32>
    %118 = arith.addf %3, %117 : vector<32x128xf32>
    %c0_56 = arith.constant 0 : index
    %c0_57 = arith.constant 0 : index
    %c0_58 = arith.constant 0 : index
    %119 = vector.load %arg7[%c0_56, %c0_57, %c0_58] : memref<1x1x128xf32, #tpu.memory_space<vmem>>, vector<1x1x128xf32>
    %120 = vector.shape_cast %119 : vector<1x1x128xf32> to vector<1x128xf32>
    %c0_59 = arith.constant 0 : index
    %c0_60 = arith.constant 0 : index
    %c0_61 = arith.constant 0 : index
    %121 = vector.load %arg8[%c0_59, %c0_60, %c0_61] : memref<1x1x128xf32, #tpu.memory_space<vmem>>, vector<1x1x128xf32>
    %122 = vector.shape_cast %121 : vector<1x1x128xf32> to vector<1x128xf32>
    %cst_62 = arith.constant dense<0.000000e+00> : vector<32xf32>
    %123 = vector.multi_reduction <add>, %118, %cst_62 [1] : vector<32x128xf32> to vector<32xf32>
    %124 = vector.shape_cast %123 : vector<32xf32> to vector<32x1xf32>
    %cst_63 = arith.constant 1.280000e+02 : f32
    %125 = vector.broadcast %cst_63 : f32 to vector<32x1xf32>
    %126 = arith.divf %124, %125 : vector<32x1xf32>
    %127 = vector.broadcast %126 : vector<32x1xf32> to vector<32x128xf32>
    %128 = arith.subf %118, %127 : vector<32x128xf32>
    %129 = arith.mulf %128, %128 : vector<32x128xf32>
    %cst_64 = arith.constant dense<0.000000e+00> : vector<32xf32>
    %130 = vector.multi_reduction <add>, %129, %cst_64 [1] : vector<32x128xf32> to vector<32xf32>
    %131 = vector.shape_cast %130 : vector<32xf32> to vector<32x1xf32>
    %cst_65 = arith.constant 1.280000e+02 : f32
    %132 = vector.broadcast %cst_65 : f32 to vector<32x1xf32>
    %133 = arith.divf %131, %132 : vector<32x1xf32>
    %134 = vector.broadcast %126 : vector<32x1xf32> to vector<32x128xf32>
    %135 = arith.subf %118, %134 : vector<32x128xf32>
    %cst_66 = arith.constant 9.99999974E-6 : f32
    %136 = vector.broadcast %cst_66 : f32 to vector<32x1xf32>
    %137 = arith.addf %133, %136 : vector<32x1xf32>
    %138 = math.rsqrt %137 : vector<32x1xf32>
    %139 = vector.broadcast %138 : vector<32x1xf32> to vector<32x128xf32>
    %140 = arith.mulf %135, %139 : vector<32x128xf32>
    %141 = vector.broadcast %120 : vector<1x128xf32> to vector<32x128xf32>
    %142 = arith.mulf %140, %141 : vector<32x128xf32>
    %143 = vector.broadcast %122 : vector<1x128xf32> to vector<32x128xf32>
    %144 = arith.addf %142, %143 : vector<32x128xf32>
    %145 = arith.truncf %144 : vector<32x128xf32> to vector<32x128xbf16>
    %c0_67 = arith.constant 0 : index
    %c0_68 = arith.constant 0 : index
    %c0_69 = arith.constant 0 : index
    %146 = vector.load %arg9[%c0_67, %c0_68, %c0_69] : memref<1x128x128xbf16, #tpu.memory_space<vmem>>, vector<1x128x128xbf16>
    %147 = vector.shape_cast %146 : vector<1x128x128xbf16> to vector<128x128xbf16>
    %cst_70 = arith.constant dense<0.000000e+00> : vector<32x128xf32>
    %148 = tpu.matmul %145, %147, %cst_70 {dimension_numbers = #tpu.dot_dimension_numbers<[1], [0], [0], [1], [0, 0, 1, 1], [], []>} : vector<32x128xbf16>, vector<128x128xbf16>, vector<32x128xf32> -> vector<32x128xf32>
    %c0_71 = arith.constant 0 : index
    %c0_72 = arith.constant 0 : index
    %c0_73 = arith.constant 0 : index
    %149 = vector.load %arg10[%c0_71, %c0_72, %c0_73] : memref<1x1x128xf32, #tpu.memory_space<vmem>>, vector<1x1x128xf32>
    %150 = vector.shape_cast %149 : vector<1x1x128xf32> to vector<1x128xf32>
    %151 = vector.broadcast %150 : vector<1x128xf32> to vector<32x128xf32>
    %152 = arith.addf %148, %151 : vector<32x128xf32>
    %cst_74 = arith.constant 0.000000e+00 : f32
    %153 = vector.broadcast %cst_74 : f32 to vector<32x128xf32>
    %154 = arith.maximumf %152, %153 : vector<32x128xf32>
    %155 = arith.truncf %154 : vector<32x128xf32> to vector<32x128xbf16>
    %c0_75 = arith.constant 0 : index
    %c0_76 = arith.constant 0 : index
    %c0_77 = arith.constant 0 : index
    %156 = vector.load %arg11[%c0_75, %c0_76, %c0_77] : memref<1x128x128xbf16, #tpu.memory_space<vmem>>, vector<1x128x128xbf16>
    %157 = vector.shape_cast %156 : vector<1x128x128xbf16> to vector<128x128xbf16>
    %cst_78 = arith.constant dense<0.000000e+00> : vector<32x128xf32>
    %158 = tpu.matmul %155, %157, %cst_78 {dimension_numbers = #tpu.dot_dimension_numbers<[1], [0], [0], [1], [0, 0, 1, 1], [], []>} : vector<32x128xbf16>, vector<128x128xbf16>, vector<32x128xf32> -> vector<32x128xf32>
    %c0_79 = arith.constant 0 : index
    %c0_80 = arith.constant 0 : index
    %c0_81 = arith.constant 0 : index
    %159 = vector.load %arg12[%c0_79, %c0_80, %c0_81] : memref<1x1x128xf32, #tpu.memory_space<vmem>>, vector<1x1x128xf32>
    %160 = vector.shape_cast %159 : vector<1x1x128xf32> to vector<1x128xf32>
    %161 = vector.broadcast %160 : vector<1x128xf32> to vector<32x128xf32>
    %162 = arith.addf %158, %161 : vector<32x128xf32>
    %163 = arith.addf %144, %162 : vector<32x128xf32>
    %c0_82 = arith.constant 0 : index
    %c0_83 = arith.constant 0 : index
    %c0_84 = arith.constant 0 : index
    %164 = vector.load %arg13[%c0_82, %c0_83, %c0_84] : memref<1x1x128xf32, #tpu.memory_space<vmem>>, vector<1x1x128xf32>
    %165 = vector.shape_cast %164 : vector<1x1x128xf32> to vector<1x128xf32>
    %c0_85 = arith.constant 0 : index
    %c0_86 = arith.constant 0 : index
    %c0_87 = arith.constant 0 : index
    %166 = vector.load %arg14[%c0_85, %c0_86, %c0_87] : memref<1x1x128xf32, #tpu.memory_space<vmem>>, vector<1x1x128xf32>
    %167 = vector.shape_cast %166 : vector<1x1x128xf32> to vector<1x128xf32>
    %cst_88 = arith.constant dense<0.000000e+00> : vector<32xf32>
    %168 = vector.multi_reduction <add>, %163, %cst_88 [1] : vector<32x128xf32> to vector<32xf32>
    %169 = vector.shape_cast %168 : vector<32xf32> to vector<32x1xf32>
    %cst_89 = arith.constant 1.280000e+02 : f32
    %170 = vector.broadcast %cst_89 : f32 to vector<32x1xf32>
    %171 = arith.divf %169, %170 : vector<32x1xf32>
    %172 = vector.broadcast %171 : vector<32x1xf32> to vector<32x128xf32>
    %173 = arith.subf %163, %172 : vector<32x128xf32>
    %174 = arith.mulf %173, %173 : vector<32x128xf32>
    %cst_90 = arith.constant dense<0.000000e+00> : vector<32xf32>
    %175 = vector.multi_reduction <add>, %174, %cst_90 [1] : vector<32x128xf32> to vector<32xf32>
    %176 = vector.shape_cast %175 : vector<32xf32> to vector<32x1xf32>
    %cst_91 = arith.constant 1.280000e+02 : f32
    %177 = vector.broadcast %cst_91 : f32 to vector<32x1xf32>
    %178 = arith.divf %176, %177 : vector<32x1xf32>
    %179 = vector.broadcast %171 : vector<32x1xf32> to vector<32x128xf32>
    %180 = arith.subf %163, %179 : vector<32x128xf32>
    %cst_92 = arith.constant 9.99999974E-6 : f32
    %181 = vector.broadcast %cst_92 : f32 to vector<32x1xf32>
    %182 = arith.addf %178, %181 : vector<32x1xf32>
    %183 = math.rsqrt %182 : vector<32x1xf32>
    %184 = vector.broadcast %183 : vector<32x1xf32> to vector<32x128xf32>
    %185 = arith.mulf %180, %184 : vector<32x128xf32>
    %186 = vector.broadcast %165 : vector<1x128xf32> to vector<32x128xf32>
    %187 = arith.mulf %185, %186 : vector<32x128xf32>
    %188 = vector.broadcast %167 : vector<1x128xf32> to vector<32x128xf32>
    %189 = arith.addf %187, %188 : vector<32x128xf32>
    %c0_93 = arith.constant 0 : index
    %c0_94 = arith.constant 0 : index
    %190 = vector.load %arg18[%c0_93, %c0_94] : memref<32x128xf32, #tpu.memory_space<vmem>>, vector<32x128xf32>
    tpu.vector_store %arg18[%c0_93, %c0_94], %189 {strides = array<i32>} : memref<32x128xf32, #tpu.memory_space<vmem>>, vector<32x128xf32>,
    %c1_i32 = arith.constant 1 : i32
    %191 = arith.cmpi eq, %arg1, %c1_i32 : i32
    %192 = arith.extui %191 : i1 to i32
    %c0_i32_95 = arith.constant 0 : i32
    %193 = arith.cmpi ne, %192, %c0_i32_95 : i32
    scf.if %193 {
      %c0_96 = arith.constant 0 : index
      %c0_97 = arith.constant 0 : index
      %194 = vector.load %arg15[%c0_96, %c0_97] : memref<1x128xf32, #tpu.memory_space<vmem>>, vector<1x128xf32>
      %c0_98 = arith.constant 0 : index
      %c0_99 = arith.constant 0 : index
      %195 = vector.load %arg16[%c0_98, %c0_99] : memref<1x128xf32, #tpu.memory_space<vmem>>, vector<1x128xf32>
      %cst_100 = arith.constant dense<0.000000e+00> : vector<32xf32>
      %196 = vector.multi_reduction <add>, %189, %cst_100 [1] : vector<32x128xf32> to vector<32xf32>
      %197 = vector.shape_cast %196 : vector<32xf32> to vector<32x1xf32>
      %cst_101 = arith.constant 1.280000e+02 : f32
      %198 = vector.broadcast %cst_101 : f32 to vector<32x1xf32>
      %199 = arith.divf %197, %198 : vector<32x1xf32>
      %200 = vector.broadcast %199 : vector<32x1xf32> to vector<32x128xf32>
      %201 = arith.subf %189, %200 : vector<32x128xf32>
      %202 = arith.mulf %201, %201 : vector<32x128xf32>
      %cst_102 = arith.constant dense<0.000000e+00> : vector<32xf32>
      %203 = vector.multi_reduction <add>, %202, %cst_102 [1] : vector<32x128xf32> to vector<32xf32>
      %204 = vector.shape_cast %203 : vector<32xf32> to vector<32x1xf32>
      %cst_103 = arith.constant 1.280000e+02 : f32
      %205 = vector.broadcast %cst_103 : f32 to vector<32x1xf32>
      %206 = arith.divf %204, %205 : vector<32x1xf32>
      %207 = vector.broadcast %199 : vector<32x1xf32> to vector<32x128xf32>
      %208 = arith.subf %189, %207 : vector<32x128xf32>
      %cst_104 = arith.constant 9.99999974E-6 : f32
      %209 = vector.broadcast %cst_104 : f32 to vector<32x1xf32>
      %210 = arith.addf %206, %209 : vector<32x1xf32>
      %211 = math.rsqrt %210 : vector<32x1xf32>
      %212 = vector.broadcast %211 : vector<32x1xf32> to vector<32x128xf32>
      %213 = arith.mulf %208, %212 : vector<32x128xf32>
      %214 = vector.broadcast %194 : vector<1x128xf32> to vector<32x128xf32>
      %215 = arith.mulf %213, %214 : vector<32x128xf32>
      %216 = vector.broadcast %195 : vector<1x128xf32> to vector<32x128xf32>
      %217 = arith.addf %215, %216 : vector<32x128xf32>
      %218 = vector.shape_cast %217 : vector<32x128xf32> to vector<2x16x128xf32>
      %c0_105 = arith.constant 0 : index
      %c0_106 = arith.constant 0 : index
      %c0_107 = arith.constant 0 : index
      %219 = vector.load %arg17[%c0_105, %c0_106, %c0_107] : memref<2x16x128xf32, #tpu.memory_space<vmem>>, vector<2x16x128xf32>
      tpu.vector_store %arg17[%c0_105, %c0_106, %c0_107], %218 {strides = array<i32>} : memref<2x16x128xf32, #tpu.memory_space<vmem>>, vector<2x16x128xf32>,
    } else {
    }
    return
  }
  func.func @transform_0(%arg0: i32, %arg1: i32) -> (i32, i32, i32) {
    %c0_i32 = arith.constant 0 : i32
    %c0_i32_0 = arith.constant 0 : i32
    %c0_i32_1 = arith.constant 0 : i32
    return %arg0, %c0_i32, %c0_i32_0 : i32, i32, i32
  }
  func.func @transform_1(%arg0: i32, %arg1: i32) -> (i32, i32, i32) {
    %c0_i32 = arith.constant 0 : i32
    %c0_i32_0 = arith.constant 0 : i32
    %c0_i32_1 = arith.constant 0 : i32
    return %arg1, %c0_i32, %c0_i32_0 : i32, i32, i32
  }
  func.func @transform_2(%arg0: i32, %arg1: i32) -> (i32, i32, i32) {
    %c0_i32 = arith.constant 0 : i32
    %c0_i32_0 = arith.constant 0 : i32
    %c0_i32_1 = arith.constant 0 : i32
    return %arg1, %c0_i32, %c0_i32_0 : i32, i32, i32
  }
  func.func @transform_3(%arg0: i32, %arg1: i32) -> (i32, i32, i32) {
    %c0_i32 = arith.constant 0 : i32
    %c0_i32_0 = arith.constant 0 : i32
    %c0_i32_1 = arith.constant 0 : i32
    return %arg1, %c0_i32, %c0_i32_0 : i32, i32, i32
  }
  func.func @transform_4(%arg0: i32, %arg1: i32) -> (i32, i32, i32) {
    %c0_i32 = arith.constant 0 : i32
    %c0_i32_0 = arith.constant 0 : i32
    %c0_i32_1 = arith.constant 0 : i32
    return %arg1, %c0_i32, %c0_i32_0 : i32, i32, i32
  }
  func.func @transform_5(%arg0: i32, %arg1: i32) -> (i32, i32, i32) {
    %c0_i32 = arith.constant 0 : i32
    %c0_i32_0 = arith.constant 0 : i32
    %c0_i32_1 = arith.constant 0 : i32
    return %arg1, %c0_i32, %c0_i32_0 : i32, i32, i32
  }
  func.func @transform_6(%arg0: i32, %arg1: i32) -> (i32, i32, i32) {
    %c0_i32 = arith.constant 0 : i32
    %c0_i32_0 = arith.constant 0 : i32
    %c0_i32_1 = arith.constant 0 : i32
    return %arg1, %c0_i32, %c0_i32_0 : i32, i32, i32
  }
  func.func @transform_7(%arg0: i32, %arg1: i32) -> (i32, i32, i32) {
    %c0_i32 = arith.constant 0 : i32
    %c0_i32_0 = arith.constant 0 : i32
    %c0_i32_1 = arith.constant 0 : i32
    return %arg1, %c0_i32, %c0_i32_0 : i32, i32, i32
  }
  func.func @transform_8(%arg0: i32, %arg1: i32) -> (i32, i32, i32) {
    %c0_i32 = arith.constant 0 : i32
    %c0_i32_0 = arith.constant 0 : i32
    %c0_i32_1 = arith.constant 0 : i32
    return %arg1, %c0_i32, %c0_i32_0 : i32, i32, i32
  }
  func.func @transform_9(%arg0: i32, %arg1: i32) -> (i32, i32, i32) {
    %c0_i32 = arith.constant 0 : i32
    %c0_i32_0 = arith.constant 0 : i32
    %c0_i32_1 = arith.constant 0 : i32
    return %arg1, %c0_i32, %c0_i32_0 : i32, i32, i32
  }
  func.func @transform_10(%arg0: i32, %arg1: i32) -> (i32, i32, i32) {
    %c0_i32 = arith.constant 0 : i32
    %c0_i32_0 = arith.constant 0 : i32
    %c0_i32_1 = arith.constant 0 : i32
    return %arg1, %c0_i32, %c0_i32_0 : i32, i32, i32
  }
  func.func @transform_11(%arg0: i32, %arg1: i32) -> (i32, i32, i32) {
    %c0_i32 = arith.constant 0 : i32
    %c0_i32_0 = arith.constant 0 : i32
    %c0_i32_1 = arith.constant 0 : i32
    return %arg1, %c0_i32, %c0_i32_0 : i32, i32, i32
  }
  func.func @transform_12(%arg0: i32, %arg1: i32) -> (i32, i32, i32) {
    %c0_i32 = arith.constant 0 : i32
    %c0_i32_0 = arith.constant 0 : i32
    %c0_i32_1 = arith.constant 0 : i32
    return %arg1, %c0_i32, %c0_i32_0 : i32, i32, i32
  }
  func.func @transform_13(%arg0: i32, %arg1: i32) -> (i32, i32) {
    %c0_i32 = arith.constant 0 : i32
    %c0_i32_0 = arith.constant 0 : i32
    %c0_i32_1 = arith.constant 0 : i32
    return %c0_i32, %c0_i32_0 : i32, i32
  }
  func.func @transform_14(%arg0: i32, %arg1: i32) -> (i32, i32) {
    %c0_i32 = arith.constant 0 : i32
    %c0_i32_0 = arith.constant 0 : i32
    %c0_i32_1 = arith.constant 0 : i32
    return %c0_i32, %c0_i32_0 : i32, i32
  }
  func.func @transform_15(%arg0: i32, %arg1: i32) -> (i32, i32, i32) {
    %c0_i32 = arith.constant 0 : i32
    %c0_i32_0 = arith.constant 0 : i32
    %c0_i32_1 = arith.constant 0 : i32
    return %arg0, %c0_i32, %c0_i32_0 : i32, i32, i32
  }
}

</mosaic_0001>

<bundles_post_ra>
// kernel: tpu_custom_call.1
= control target key start
LH: loop header
LB: loop body
LE: loop exit
PB: predicated region body
PF: predicated region fallthrough
CT: control target
= control target key end

     0   :  { %s4606_s0 = inlined_call_operand.hbm [shape: f32[2,16,128], index: 0, kind: input, shape index: {}]   ;;  %s4607_s1 = inlined_call_operand.hbm [shape: bf16[2,128,384], index: 1, kind: input, shape index: {}]   ;;  %s4608_s2 = inlined_call_operand.hbm [shape: f32[2,1,384], index: 2, kind: input, shape index: {}]   ;;  %s4609_s3 = inlined_call_operand.hbm [shape: bf16[2,128,128], index: 3, kind: input, shape index: {}]   ;;  %s4610_s4 = inlined_call_operand.vmem [shape: f32[2,1,128], index: 4, kind: input, shape index: {}]   ;;  %s4611_s5 = inlined_call_operand.vmem [shape: f32[2,1,128], index: 5, kind: input, shape index: {}]   ;;  %s4612_s6 = inlined_call_operand.vmem [shape: f32[2,1,128], index: 6, kind: input, shape index: {}]   ;;  %s4613_s7 = inlined_call_operand.hbm [shape: bf16[2,128,128], index: 7, kind: input, shape index: {}]   ;;  %s4614_s8 = inlined_call_operand.vmem [shape: f32[2,1,128], index: 8, kind: input, shape index: {}]   ;;  %s4615_s9 = inlined_call_operand.hbm [shape: bf16[2,128,128], index: 9, kind: input, shape index: {}]   ;;  %s4616_s10 = inlined_call_operand.vmem [shape: f32[2,1,128], index: 10, kind: input, shape index: {}]   ;;  %s4617_s11 = inlined_call_operand.vmem [shape: f32[2,1,128], index: 11, kind: input, shape index: {}]   ;;  %s4618_s12 = inlined_call_operand.vmem [shape: f32[2,1,128], index: 12, kind: input, shape index: {}]   ;;  %s4619_s13 = inlined_call_operand.vmem [shape: f32[1,128], index: 13, kind: input, shape index: {}]   ;;  %s4620_s14 = inlined_call_operand.vmem [shape: f32[1,128], index: 14, kind: input, shape index: {}]   ;;  %s4621_s15 = inlined_call_operand.hbm [shape: f32[2,16,128], index: 15, kind: output, shape index: {}]  }
   0x1   :  { %4632 = sst [smem:[#allocation28_spill]] %s4606_s0 }
   0x2   :  { %4633 = sst [smem:[#allocation29_spill]] %s4607_s1 }
   0x3   :  { %4634 = sst [smem:[#allocation30_spill]] %s4608_s2 }
   0x4   :  { %4635 = sst [smem:[#allocation31_spill]] %s4609_s3 }
   0x5   :  { %4636 = sst [smem:[#allocation32_spill]] %s4611_s5 }
   0x6   :  { %4637 = sst [smem:[#allocation33_spill]] %s4612_s6 }
   0x7   :  { %4638 = sst [smem:[#allocation34_spill]] %s4613_s7 }
   0x8   :  { %4639 = sst [smem:[#allocation35_spill]] %s4614_s8 }
   0x9   :  { %4640 = sst [smem:[#allocation36_spill]] %s4615_s9 }
   0xa   :  { %4641 = sst [smem:[#allocation37_spill]] %s4616_s10 }
   0xb   :  { %4642 = sst [smem:[#allocation38_spill]] %s4617_s11 }
   0xc   :  { %4643 = sst [smem:[#allocation39_spill]] %s4618_s12 }
   0xd   :  { %4644 = sst [smem:[#allocation40_spill]] %s4619_s13 }
   0xe   :  { %4645 = sst [smem:[#allocation41_spill]] %s4620_s14 }
   0xf   :  { %4646 = sst [smem:[#allocation42_spill]] %s4621_s15 }
  0x10   :  { %20 = vsyncpa [#allocation6], 0 }
  0x11   :  { %21 = vsyncpa [#allocation9], 0 }
  0x12   :  { %23 = vsyncpa [#allocation9 + $0x1], 0 }
  0x13   :  { %24 = vsyncpa [#allocation12], 0 }
  0x14   :  { %26 = vsyncpa [#allocation12 + $0x1], 0 }
  0x15   :  { %27 = vsyncpa [#allocation15], 0 }
  0x16   :  { %29 = vsyncpa [#allocation15 + $0x1], 0 }
  0x17   :  { %30 = vsyncpa [#allocation7], 0  ;;  %s4017_s18 = smov 0   ;;  %s4019_s19 = smov 0  }
  0x18   :  { %s4021_s20 = smov 0   ;;  %s4023_s21 = smov 0  }
  0x19   :  { %s4025_s22 = smov 0   ;;  %s4027_s23 = smov 0  }
  0x1a LB: > { %4647 = sst [smem:[#allocation22_spill]] %s3898_s19  ;;  %s45_s24 = sadd.s32 1, %s3910_s22  ;;  %s3914_s23 = sphi %s4027_s23, %s36_s23   ;;  %s3910_s22 = sphi %s4025_s22, %s4689_s22   ;;  %s3906_s21 = sphi %s4023_s21, %s4688_s21   ;;  %s3902_s20 = sphi %s4021_s20, %s4687_s20   ;;  %s3898_s19 = sphi %s4019_s19, %s4686_s19   ;;  %s3894_s18 = sphi %s4017_s18, %s4685_s18  }
  0x1b   : > { %4648 = sst [smem:[#allocation23_spill]] %s3902_s20  ;;  %s81_s25 = sadd.s32 1, %s3902_s20 }
  0x1c   : > { %4649 = sst [smem:[#allocation24_spill]] %s3910_s22  ;;  %p46_p0 = scmp.ge.s32.totalorder %s45_s24, 2 }
  0x1d   : > { %4650 = sst [smem:[#allocation25_spill]] %s3914_s23  ;;  %p88_p1 = scmp.ne.s32.totalorder %s3902_s20, %s3898_s19 }
  0x1e   : > { %p89_p2 = scmp.eq.s32.totalorder %s3914_s23, 0  ;;  %s4691_s24 = smov (%p46_p0, %s45_s24), 0 }
  0x1f   : > { %4651 = sst [smem:[#allocation26_spill]] %s4691_s24  ;;  %p3442_p4 = scmp.lt.s32.totalorder %s3914_s23, 2 }
  0x20   : > { %p90_p3 = por %p89_p2, %p88_p1  ;;  %s78_s26 = ssub.s32 %s3910_s22, %s4691_s24 }
  0x21   : > { %s4623_s27 = sand.u32 1, %s3914_s23   ;;  %p79_p5 = scmp.eq.s32.totalorder %s78_s26, 0 }
  0x22   : > { %s4059_s28 = sand.u32 1, %s3902_s20   ;;  %s3398_s29 = smul.u32 3072, %s3910_s22 }
  0x23   : > { %s4063_s30 = scalar_select %p79_p5, %s3902_s20, %s81_s25  }
  0x24   : > { %s3397_s16 = smul.u32 192, %s4059_s28  ;;  %s4653_s1 = sld [smem:[#allocation29_spill]] }
  0x25   : > { %4652 = sst [smem:[#allocation27_spill]] %s4063_s30  ;;  %p4069_p6 = pnand %p3442_p4, %p90_p3 }
  0x26   : > { %s499_s12 = scalar_lea.vmem [#allocation8], %s3397_s16  ;;  %s4075_s26 = scalar_lea.sflag [#allocation9], %s4623_s27 }
  0x27   : > { %s506_s24 = sshll.u32 %s499_s12, 4  ;;  %p4079_p7 = pneg %p4069_p6  ;;  %s507_s24 = int_to_ptr.vmem [resolvable:$true] %s506_s24 }
  0x28   : > { %s3671_s30 = scalar_lea.vmem %s507_s24, 3072  ;;  %s3916_s15 = smov [#allocation8]  }
  0x29   : > { %p3672_p8 = scmp.ne.s32.totalorder %s507_s24, %s3671_s30 }
  0x2a   : > { %s505_s14 = scalar_lea.hbm %s4653_s1, %s3398_s29  ;;  %s3676_s29 = sshll.u32 %s3916_s15, 4  ;;  %s3677_s29 = int_to_ptr.vmem [resolvable:$false] %s3676_s29 }
  0x2b   : > { %p3674_p9 = pnand %p3672_p8, %p4079_p7  ;;  %s3678_s16 = scalar_lea.vmem %s3677_s29, 6144 }
  0x2c   : > { %p3679_p11 = scmp.lt.s32.totalorder %s507_s24, %s3677_s29  ;;  %p3680_p12 = scmp.lt.s32.totalorder %s3678_s16, %s3671_s30 }
  0x2d   : > { %p3675_p10 = pneg %p3674_p9 }
  0x2e   : > { %p3681_p13 = por %p3680_p12, %p3679_p11 }
  0x30   : > { %p3682_p0 = pnand %p3681_p13, %p3675_p10 }
  0x32   : > { %3685 = shalt.err (!%p3682_p0)
}
  0x33   : > { %s3917_s12 = smov 192   ;;  %s3918_s17 = smov 12  }
  0x34   : > { %3428 = dma.hbm_to_vmem [thread:$0]  (!%p4069_p6), %s505_s14, 3072, %s507_s24, %s4075_s26, %s3917_s12, %s3917_s12, %s3918_s17  }
  0x35   : > { %s4089_s27 = sshll.u32 %s4059_s28, 6  ;;  %s4092_s15 = sshll.u32 %s3910_s22, 10 }
  0x36   : > { %s4656_s3 = sld [smem:[#allocation31_spill]]  ;;  %s539_s1 = scalar_lea.vmem [#allocation11], %s4089_s27 }
  0x37   : > { %s546_s20 = sshll.u32 %s539_s1, 4  ;;  %s4657_s11 = sand.u32 1, %s3914_s23   ;;  %s547_s20 = int_to_ptr.vmem [resolvable:$true] %s546_s20 }
  0x38   : > { %s4101_s10 = scalar_lea.sflag [#allocation12], %s4657_s11  ;;  %s3699_s8 = scalar_lea.vmem %s547_s20, 1024 }
  0x39   : > { %p3700_p1 = scmp.ne.s32.totalorder %s547_s20, %s3699_s8  ;;  %s3919_s14 = smov [#allocation11]  }
  0x3a   : > { %s3704_s24 = sshll.u32 %s3919_s14, 4  ;;  %s3705_s24 = int_to_ptr.vmem [resolvable:$false] %s3704_s24 }
  0x3b   : > { %p3702_p2 = pnand %p3700_p1, %p4079_p7  ;;  %s3706_s12 = scalar_lea.vmem %s3705_s24, 2048 }
  0x3c   : > { %s545_s16 = scalar_lea.hbm %s4656_s3, %s4092_s15  ;;  %p3707_p4 = scmp.lt.s32.totalorder %s547_s20, %s3705_s24 }
  0x3d   : > { %p3703_p3 = pneg %p3702_p2  ;;  %p3708_p5 = scmp.lt.s32.totalorder %s3706_s12, %s3699_s8 }
  0x3f   : > { %p3709_p8 = por %p3708_p5, %p3707_p4 }
  0x41   : > { %p3710_p9 = pnand %p3709_p8, %p3703_p3 }
  0x43   : > { %3713 = shalt.err (!%p3710_p9)
}
  0x44   : > { %s4625_s17 = smov 64   ;;  %s4627_s1 = smov 4  }
  0x45   : > { %3434 = dma.hbm_to_vmem [thread:$0]  (!%p4069_p6), %s545_s16, 1024, %s547_s20, %s4101_s10, %s4625_s17, %s4625_s17, %s4627_s1  }
  0x46   : > { %s4112_s8 = sadd.s32 4294967295, %s3914_s23   ;;  %p94_p10 = scmp.ne.s32.totalorder %s3898_s19, %s3894_s18 }
  0x47   : > { %p95_p11 = scmp.eq.s32.totalorder %s4112_s8, 0  ;;  %p3048_p12 = scmp.ge.s32.totalorder %s3914_s23, 1 }
  0x48   : > { %p459_p13 = scmp.lt.s32.totalorder %s3914_s23, 3  ;;  %s3922_s20 = smov [#allocation5]  }
  0x49   : > { %p4121_p0 = por %p95_p11, %p94_p10  ;;  %s475_s29 = sshll.u32 %s3922_s20, 4  ;;  %s476_s29 = int_to_ptr.vmem [resolvable:$true] %s475_s29 }
  0x4a   : > { %p4125_p1 = pnand %p3048_p12, %p459_p13  ;;  %s3399_s16 = smul.u32 3, %s4059_s28 }
  0x4b   : > { %s3400_s14 = smul.u32 48, %s3910_s22  ;;  %s4661_s7 = sld [smem:[#allocation34_spill]] }
  0x4c   : > { %p3421_p2 = pneg %p4125_p1  ;;  %s4662_s2 = sld [smem:[#allocation30_spill]] }
  0x4d   : > { %s3725_s20 = scalar_lea.vmem %s476_s29, 512  ;;  %p3733_p10 = scmp.lt.s32.totalorder %s476_s29, %s476_s29 }
  0x4e   : > { %p4134_p3 = pnand %p3421_p2, %p95_p11  ;;  %p3726_p5 = scmp.ne.s32.totalorder %s476_s29, %s3725_s20 }
  0x4f   : > { %p3734_p12 = scmp.lt.s32.totalorder %s3725_s20, %s3725_s20 }
  0x50   : > { %p3716_p4 = pneg %p4134_p3 }
  0x51   : > { %p3735_p13 = por %p3734_p12, %p3733_p10 }
  0x52   : > { %s4146_s23 = scalar_lea.hbm %s4662_s2, %s3400_s14  ;;  %p3728_p8 = pnand %p3726_p5, %p3716_p4 }
  0x54   : > { %p3729_p9 = pneg %p3728_p8 }
  0x56   : > { %p3736_p2 = pnand %p3735_p13, %p3729_p9 }
  0x58   : > { %3739 = shalt.err (!%p3736_p2)
}
  0x59   : > { %s3923_s22 = smov 128   ;;  %s3924_s24 = smov 8  }
  0x5a   : > { %s4663_s0 = sld [smem:[#allocation28_spill]]  ;;  %s520_s14 = scalar_lea.vmem [#allocation10], %s3399_s16 }
  0x5b   : > { %s528_s12 = sshll.u32 %s520_s14, 4  ;;  %s578_s17 = scalar_lea.vmem [#allocation13], %s4089_s27  ;;  %s529_s12 = int_to_ptr.vmem [resolvable:$true] %s528_s12 }
  0x5c   : > { %s585_s2 = sshll.u32 %s578_s17, 4  ;;  %s3753_s20 = scalar_lea.vmem %s529_s12, 48  ;;  %s4156_s2 = int_to_ptr.vmem [resolvable:$true] %s585_s2 }
  0x5d   : > { %p3754_p4 = scmp.ne.s32.totalorder %s529_s12, %s3753_s20  ;;  %s3925_s6 = smov [#allocation10]  }
  0x5e   : > { %s3758_s5 = sshll.u32 %s3925_s6, 4  ;;  %s3759_s5 = int_to_ptr.vmem [resolvable:$false] %s3758_s5 }
  0x5f   : > { %p3756_p5 = pnand %p3754_p4, %p4079_p7  ;;  %s3760_s18 = scalar_lea.vmem %s3759_s5, 96 }
  0x60   : > { %3424 = dma.hbm_to_vmem [thread:$0]  (!%p4134_p3), %s4663_s0, 512, %s476_s29, [#allocation6], %s3923_s22, %s3923_s22, %s3924_s24  }
  0x61   : > { %p3757_p8 = pneg %p3756_p5  ;;  %p3761_p9 = scmp.lt.s32.totalorder %s529_s12, %s3759_s5 }
  0x62   : > { %p3762_p10 = scmp.lt.s32.totalorder %s3760_s18, %s3753_s20 }
  0x64   : > { %p3763_p12 = por %p3762_p10, %p3761_p9 }
  0x66   : > { %p3764_p3 = pnand %p3763_p12, %p3757_p8 }
  0x68   : > { %3767 = shalt.err (!%p3764_p3)
}
  0x69   : > { %3431 = dma.hbm_to_vmem [thread:$0]  (!%p4069_p6), %s4146_s23, 48, %s529_s12, %s4075_s26  }
  0x6a   : > { %s3781_s22 = scalar_lea.vmem %s4156_s2, 1024  ;;  %s3926_s6 = smov [#allocation13]  }
  0x6b   : > { %p3782_p13 = scmp.ne.s32.totalorder %s4156_s2, %s3781_s22  ;;  %s3786_s5 = sshll.u32 %s3926_s6, 4  ;;  %s3787_s5 = int_to_ptr.vmem [resolvable:$false] %s3786_s5 }
  0x6c   : > { %s3788_s17 = scalar_lea.vmem %s3787_s5, 2048  ;;  %p3789_p5 = scmp.lt.s32.totalorder %s4156_s2, %s3787_s5 }
  0x6d   : > { %p3784_p2 = pnand %p3782_p13, %p4079_p7  ;;  %p3790_p8 = scmp.lt.s32.totalorder %s3788_s17, %s3781_s22 }
  0x6f   : > { %p3785_p4 = pneg %p3784_p2  ;;  %p3791_p9 = por %p3790_p8, %p3789_p5 }
  0x71   : > { %p3792_p10 = pnand %p3791_p9, %p3785_p4 }
  0x73   : > { %3795 = shalt.err (!%p3792_p10)
}
  0x74   : > { %s4664_s29 = smov 4   ;;  %s4665_s16 = smov 64  }
  0x75   : > { %s4666_s24 = scalar_lea.hbm %s4661_s7, %s4092_s15  ;;  %s4667_s9 = sld [smem:[#allocation36_spill]] }
  0x76   : > { %3437 = dma.hbm_to_vmem [thread:$0]  (!%p4069_p6), %s4666_s24, 1024, %s4156_s2, %s4101_s10, %s4665_s16, %s4665_s16, %s4664_s29  }
  0x77   : > { %s605_s12 = scalar_lea.vmem [#allocation14], %s4089_s27  ;;  %s602_s18 = scalar_lea.sflag [#allocation15], %s4059_s28 }
  0x78   : > { %s612_s20 = sshll.u32 %s605_s12, 4  ;;  %s3927_s6 = smov [#allocation14]   ;;  %s613_s20 = int_to_ptr.vmem [resolvable:$true] %s612_s20 }
  0x79   : > { %s3809_s22 = scalar_lea.vmem %s613_s20, 1024  ;;  %s3814_s5 = sshll.u32 %s3927_s6, 4  ;;  %s3815_s5 = int_to_ptr.vmem [resolvable:$false] %s3814_s5 }
  0x7a   : > { %p3810_p12 = scmp.ne.s32.totalorder %s613_s20, %s3809_s22  ;;  %s3816_s17 = scalar_lea.vmem %s3815_s5, 2048 }
  0x7b   : > { %s611_s14 = scalar_lea.hbm %s4667_s9, %s4092_s15  ;;  %p3817_p2 = scmp.lt.s32.totalorder %s613_s20, %s3815_s5 }
  0x7c   : > { %p3812_p3 = pnand %p3810_p12, %p4079_p7  ;;  %p3818_p4 = scmp.lt.s32.totalorder %s3816_s17, %s3809_s22 }
  0x7e   : > { %p3813_p13 = pneg %p3812_p3  ;;  %p3819_p5 = por %p3818_p4, %p3817_p2 }
  0x80   : > { %p3820_p8 = pnand %p3819_p5, %p3813_p13 }
  0x82   : > { %3823 = shalt.err (!%p3820_p8)
}
  0x83   : > { %3440 = dma.hbm_to_vmem [thread:$0]  (!%p4069_p6), %s611_s14, 1024, %s613_s20, %s602_s18, %s4665_s16, %s4665_s16, %s4664_s29  }
  0x84   : > { %642 = sbr.rel (%p4125_p1) target bundleno = 4467 (0x1173), region = 80 }
  0x89   : > { %3873 = dma.done.wait (%p95_p11), [#allocation6], 512  }
  0x8a   : > { %3875 = vsyncadd (%p95_p11), [#allocation6], 4294966784  ;;  %s648_s2 = sand.u32 1, %s4112_s8   ;;  %s650_s10 = sand.u32 1, %s3898_s19  }
  0x8b   : > { %s3401_s27 = smul.u32 192, %s650_s10  ;;  %s649_s13 = scalar_lea.sflag [#allocation9], %s648_s2 }
  0x8d   : > { %s4202_s28 = scalar_lea.vmem [#allocation8], %s3401_s27 }
  0x8e   : > { %3877 = dma.done.wait (%p4121_p0), %s649_s13, 3120  }
  0x8f   : > { %3879 = vsyncadd (%p4121_p0), %s649_s13, 4294964176  ;;  %s3402_s25 = smul.u32 3, %s650_s10  ;;  %s3064_s15 = sshll.u32 %s650_s10, 6 }
  0x90   : > { %s667_s29 = scalar_lea.sflag [#allocation12], %s648_s2  ;;  %s4210_s16 = scalar_lea.vmem [#allocation11], %s3064_s15 }
  0x91   : > { %s4208_s30 = scalar_lea.vmem [#allocation10], %s3402_s25 }
  0x92   : > { %3881 = dma.done.wait (%p4121_p0), %s667_s29, 2048  }
  0x93   : > { %3883 = vsyncadd (%p4121_p0), %s667_s29, 4294965248  ;;  %s4216_s23 = scalar_lea.vmem [#allocation13], %s3064_s15  ;;  %s685_s26 = scalar_lea.sflag [#allocation15], %s650_s10 }
  0x94   : > { %s4218_s24 = scalar_lea.vmem [#allocation14], %s3064_s15 }
  0x95   : > { %3885 = dma.done.wait (%p4121_p0), %s685_s26, 1024  }
  0x96   : > { %3887 = vsyncadd (%p4121_p0), %s685_s26, 4294966272  ;;  %p772_p6 = scmp.lt.s32.totalorder %s3906_s21, 1  ;;  %s4668_s11 = sld [smem:[#allocation32_spill]] }
  0x97   : > { %s4669_s17 = sld [smem:[#allocation33_spill]]  ;;  %p3067_p7 = scmp.ne.s32.totalorder %s3906_s21, 0 }
  0x98   : > { %s4226_s3 = scalar_select %p772_p6, %s3906_s21, 1 }
  0x99   : > { %s4670_s13 = sld [smem:[#allocation35_spill]] }
  0x9a   : > { %s4671_s26 = sld [smem:[#allocation37_spill]] }
  0x9b   : > { %s4672_s7 = sld [smem:[#allocation38_spill]] }
  0x9c   : > { %s777_s22 = scalar_lea.vmem %s4668_s11, %s4226_s3  ;;  %s4673_s20 = sld [smem:[#allocation39_spill]] }
  0x9d   : > { %s780_s2 = scalar_lea.vmem %s4669_s17, %s4226_s3 }
  0x9e   : > { %798 = sbr.rel (%p3067_p7) target bundleno = 166 (0xa6), region = 108 }
  0x9f   : > { %s783_s25 = scalar_lea.vmem %s4670_s13, %s4226_s3 }
  0xa0   : > { %s786_s1 = scalar_lea.vmem %s4671_s26, %s4226_s3 }
  0xa1   : > { %s789_s12 = scalar_lea.vmem %s4672_s7, %s4226_s3 }
  0xa2   : > { %s792_s18 = scalar_lea.vmem %s4673_s20, %s4226_s3 }
  0xa3   : > { %v799_v0 = vld [vmem:[#allocation5] sm:$0xff]  ;;  %v800_v1 = vld [vmem:[#allocation5 + $0x8] sm:$0xff]  ;;  %v801_v2 = vld [vmem:[#allocation5 + $0x10] sm:$0xff] }
  0xa4   : > { %803 = vst [vmem:[#allocation2 + $0x10] sm:$0xff] %v799_v0  ;;  %804 = vst [vmem:[#allocation2] sm:$0xff] %v800_v1  ;;  %v802_v3 = vld [vmem:[#allocation5 + $0x18] sm:$0xff] }
  0xa5   : > { %805 = vst [vmem:[#allocation2 + $0x18] sm:$0xff] %v801_v2  ;;  %806 = vst [vmem:[#allocation2 + $0x8] sm:$0xff] %v802_v3 }
  0xa6 PF: > { %v3510_v4 = vld [vmem:[%s4202_s28 + $0xac] ss:$12 sps:$4 sm:$0xff]   ;;  %v3512_v5 = vld [vmem:[%s4202_s28 + $0xa8] ss:$12 sps:$4 sm:$0xff]   ;;  %v3928_v6 = vmov 0   ;;  %v3929_v27 = vmov 0.0   ;;  %v847_v28 = vlaneseq }
  0xa7   : > { %1022 = vmatprep.mubr.bf16.mxu0 %v3928_v6  ;;  %990 = vmatprep.subr.bf16.mxu0 %v3510_v4  ;;  %v3513_v7 = vld [vmem:[%s4202_s28 + $0x94] ss:$12 sps:$4 sm:$0xff]   ;;  %v3515_v8 = vld [vmem:[%s4202_s28 + $0x90] ss:$12 sps:$4 sm:$0xff]   ;;  %v3518_v10 = vld [vmem:[%s4202_s28 + $0x78] ss:$12 sps:$4 sm:$0xff]  }
  0xa8   : > { %991 = vmatpush1.bf16.msra.mxu0 %v3512_v5  ;;  %v3516_v9 = vld [vmem:[%s4202_s28 + $0x7c] ss:$12 sps:$4 sm:$0xff]   ;;  %v3519_v11 = vld [vmem:[%s4202_s28 + $0x64] ss:$12 sps:$4 sm:$0xff]   ;;  %v3521_v13 = vld [vmem:[%s4202_s28 + $0x60] ss:$12 sps:$4 sm:$0xff]  }
  0xa9   : > { %992 = vmatprep.subr.bf16.mxu0 %v3513_v7  ;;  %v3522_v15 = vld [vmem:[%s4202_s28 + $0x4c] ss:$12 sps:$4 sm:$0xff]   ;;  %v3524_v17 = vld [vmem:[%s4202_s28 + $0x48] ss:$12 sps:$4 sm:$0xff]   ;;  %v3527_v19 = vld [vmem:[%s4202_s28 + $0x30] ss:$12 sps:$4 sm:$0xff]  }
  0xaa   : > { %v3525_v18 = vld [vmem:[%s4202_s28 + $0x34] ss:$12 sps:$4 sm:$0xff]   ;;  %v3528_v20 = vld [vmem:[%s4202_s28 + $0x1c] ss:$12 sps:$4 sm:$0xff]   ;;  %v3530_v21 = vld [vmem:[%s4202_s28 + $0x18] ss:$12 sps:$4 sm:$0xff]  }
  0xab   : > { %v807_v12 = vld [vmem:[#allocation2 + $0x10] sm:$0xff]  ;;  %v808_v14 = vld [vmem:[#allocation2] sm:$0xff]  ;;  %vm3930_vm0 = vmmov 0   ;;  %v4279_v29 = vshrl.u32 %v847_v28, 7  ;;  %vm1122_vm1 = vcmask 261120   ;;  %vm1217_vm2 = vcmask 130048  }
  0xac   : > { %993 = vmatpush1.bf16.msra.mxu0 %v3515_v8  ;;  %v811_v16 = vpack.c.bf16 %v808_v14, %v807_v12  ;;  %v3531_v22 = vld [vmem:[%s4202_s28 + $0x4] ss:$12 sps:$4 sm:$0xff]   ;;  %v3533_v23 = vld [vmem:[%s4202_s28] ss:$12 sps:$4 sm:$0xff]   ;;  %v809_v24 = vld [vmem:[#allocation2 + $0x18] sm:$0xff]  ;;  %s3931_s0 = smov 96  }
  0xad   : > { %994 = vmatprep.subr.bf16.mxu0 %v3516_v9  ;;  %v810_v25 = vld [vmem:[#allocation2 + $0x8] sm:$0xff]  ;;  %v853_v30 = vsub.s32 1, %v4279_v29  ;;  %v4283_v32 = vld [vmem:[%s4208_s30] sm:$0x7]  ;;  %v849_v37 = vsub.s32 0, %v4279_v29  ;;  %s3932_s7 = smov 64   ;;  %s4674_s30 = scalar_lea.vmem %s4610_s4, %s4226_s3 }
  0xae   : > { %3237 = vmatprep.mubr.bf16.mxu1 %v811_v16  ;;  %v4273_v26 = vpack.c.bf16 %v810_v25, %v809_v24  ;;  %v3534_v57 = vld [vmem:[%s4202_s28 + $0xb0] ss:$12 sps:$4 sm:$0xff]   ;;  %v3535_v58 = vld [vmem:[%s4202_s28 + $0x98] ss:$12 sps:$4 sm:$0xff]   ;;  %v3536_v59 = vld [vmem:[%s4202_s28 + $0x80] ss:$12 sps:$4 sm:$0xff]  }
  0xaf   : > { %v854_v34 = vrot.slane %v4283_v32, %v853_v30  ;;  %v850_v43 = vrot.slane %v4283_v32, %v849_v37  ;;  %3221 = vmatprep.subr.bf16.mxu1 %v3534_v57  ;;  %v3537_v60 = vld [vmem:[%s4202_s28 + $0x68] ss:$12 sps:$4 sm:$0xff]   ;;  %v3538_v61 = vld [vmem:[%s4202_s28 + $0x50] ss:$12 sps:$4 sm:$0xff]   ;;  %v3539_v62 = vld [vmem:[%s4202_s28 + $0x38] ss:$12 sps:$4 sm:$0xff]  }
  0xb0   : > { %995 = vmatpush1.bf16.msra.mxu0 %v3518_v10  ;;  %3222 = vmatpush3.bf16.msra.mxu1 %v3534_v57  ;;  %v3540_v63 = vld [vmem:[%s4202_s28 + $0x20] ss:$12 sps:$4 sm:$0xff]   ;;  %v3541_v0 = vld [vmem:[%s4202_s28 + $0x8] ss:$12 sps:$4 sm:$0xff]   ;;  %v857_v30 = vsub.s32 2, %v4279_v29  ;;  %s3933_s9 = smov 32  }
  0xb1   : > { %996 = vmatprep.subr.bf16.mxu0 %v3519_v11  ;;  %3223 = vmatprep.subr.bf16.mxu1 %v3535_v58  ;;  %vm1638_vm3 = vcmask 523520   ;;  %vm1925_vm4 = vcmask 785920   ;;  %vm2212_vm5 = vcmask 1048320   ;;  %p3139_p11 = scmp.ne.s32.totalorder %s3906_s21, 1 }
  0xb4   : > { %997 = vmatpush1.bf16.msra.mxu0 %v3521_v13  ;;  %3224 = vmatpush3.bf16.msra.mxu1 %v3535_v58 }
  0xb5   : > { %998 = vmatprep.subr.bf16.mxu0 %v3522_v15  ;;  %3225 = vmatprep.subr.bf16.mxu1 %v3536_v59 }
  0xb8   : > { %999 = vmatpush1.bf16.msra.mxu0 %v3524_v17  ;;  %3226 = vmatpush3.bf16.msra.mxu1 %v3536_v59 }
  0xb9   : > { %1000 = vmatprep.subr.bf16.mxu0 %v3525_v18  ;;  %3227 = vmatprep.subr.bf16.mxu1 %v3537_v60 }
  0xbc   : > { %1001 = vmatpush1.bf16.msra.mxu0 %v3527_v19  ;;  %3228 = vmatpush3.bf16.msra.mxu1 %v3537_v60 }
  0xbd   : > { %1002 = vmatprep.subr.bf16.mxu0 %v3528_v20  ;;  %3229 = vmatprep.subr.bf16.mxu1 %v3538_v61 }
  0xc0   : > { %1003 = vmatpush1.bf16.msra.mxu0 %v3530_v21  ;;  %3230 = vmatpush3.bf16.msra.mxu1 %v3538_v61 }
  0xc1   : > { %1004 = vmatprep.subr.bf16.mxu0 %v3531_v22  ;;  %3231 = vmatprep.subr.bf16.mxu1 %v3539_v62 }
  0xc4   : > { %1005 = vmatpush1.bf16.msra.mxu0 %v3533_v23  ;;  %3232 = vmatpush3.bf16.msra.mxu1 %v3539_v62 }
  0xc5   : > { %3241 = vmatprep.subr.bf16.mxu0 %v3929_v27  ;;  %3233 = vmatprep.subr.bf16.mxu1 %v3540_v63 }
  0xc7   : > { %1023 = vmatmul.mubr.bf16.vlgmr.msra.gmra.mxu0 %v811_v16 }
  0xc8   : > { %1032 = vmatprep.mubr.bf16.mxu0 %v3928_v6  ;;  %3234 = vmatpush3.bf16.msra.mxu1 %v3540_v63 }
  0xc9   : > { %3235 = vmatprep.subr.bf16.mxu1 %v3541_v0 }
  0xcc   : > { %3236 = vmatpush3.bf16.msra.mxu1 %v3541_v0 }
  0xcd   : > { %3253 = vmatprep.subr.bf16.mxu1 %v3929_v27 }
  0xcf   : > { %1033 = vmatmul.mubr.bf16.gmra.mxu0 %v4273_v26  ;;  %3238 = vmatmul.mubr.bf16.vlgmr.msra.gmra.mxu1 %v4273_v26 }
  0xd0   : > { %3243 = vmatprep.mubr.msk.bf16.mxu0 %vm3930_vm0, %v3929_v27  ;;  %3255 = vmatprep.mubr.msk.bf16.mxu1 %vm3930_vm0, %v3929_v27 }
 0x187   : > { %v1024_v31 = vpop.f32.mrf.mxu0 }
 0x188   : > { %v1025_v49 = vadd.f32 %v1024_v31, %v850_v43 }
 0x189   : > { %v1026_v33 = vpop.f32.mrf.mxu0 }
 0x18a   : > { %v1027_v38 = vadd.f32 %v1026_v33, %v854_v34  ;;  %v858_v33 = vrot.slane %v4283_v32, %v857_v30 }
 0x18b   : > { %v1028_v35 = vpop.f32.mrf.mxu0 }
 0x18c   : > { %v1029_v46 = vadd.f32 %v1028_v35, %v850_v43 }
 0x18d   : > { %v1030_v36 = vpop.f32.mrf.mxu0 }
 0x18e   : > { %v1031_v39 = vadd.f32 %v1030_v36, %v854_v34  ;;  %v4293_v51 = vpack.c.bf16 %v1029_v46, %v1025_v49 }
 0x18f   : > { %v1034_v40 = vpop.f32.mrf.mxu0  ;;  %v3239_v31 = vpop.f32.mrf.mxu1 }
 0x190   : > { %v4287_v41 = vpack.c.bf16 %v1031_v39, %v1027_v38  ;;  %v1035_v53 = vadd.f32 %v1034_v40, %v850_v43  ;;  %v1086_v35 = vadd.f32 %v3239_v31, %v858_v33 }
 0x191   : > { %v1036_v42 = vpop.f32.mrf.mxu0 }
 0x192   : > { %v1127_v44 = vsel %vm1122_vm1, %v4287_v41, 0  ;;  %v1037_v47 = vadd.f32 %v1036_v42, %v854_v34 }
 0x193   : > { %v1038_v45 = vpop.f32.mrf.mxu0  ;;  %3242 = vmatpush3.bf16.xpose.msra.mxu0 %v1127_v44 }
 0x194   : > { %3247 = vmatprep.subr.bf16.mxu0 %v3929_v27  ;;  %v1039_v54 = vadd.f32 %v1038_v45, %v850_v43 }
 0x195   : > { %v1040_v48 = vpop.f32.mrf.mxu0 }
 0x196   : > { %v1041_v50 = vadd.f32 %v1040_v48, %v854_v34  ;;  %v4304_v56 = vpack.c.bf16 %v1039_v54, %v1035_v53  ;;  %v1077_v34 = vpop.f32.mrf.mxu1 }
 0x197   : > { %v1078_v37 = vadd.f32 %v1077_v34, %v858_v33 }
 0x198   : > { %v4295_v52 = vpack.c.bf16 %v1041_v50, %v1037_v47  ;;  %v3240_v36 = vpop.f32.mrf.mxu1 }
 0x199   : > { %v1089_v38 = vadd.f32 %v3240_v36, %v858_v33 }
 0x19a   : > { %3244 = vmatmul.mubr.msk.bf16.vlgmr.msra.gmra.mxu0 %vm1122_vm1, %v4293_v51  ;;  %v1174_v55 = vsel %vm1122_vm1, %v4295_v52, 0  ;;  %v1080_v39 = vpop.f32.mrf.mxu1 }
 0x19b   : > { %3248 = vmatpush3.bf16.xpose.msra.mxu0 %v1174_v55  ;;  %3249 = vmatprep.mubr.msk.bf16.mxu0 %vm3930_vm0, %v3929_v27  ;;  %v4333_v40 = vpack.c.bf16 %v1089_v38, %v1086_v35  ;;  %v1081_v42 = vadd.f32 %v1080_v39, %v858_v33 }
 0x19c   : > { %3259 = vmatprep.subr.bf16.mxu0 %v3929_v27 }
 0x19d   : > { %v4335_v43 = vpack.c.bf16 %v1081_v42, %v1078_v37 }
 0x19f   : > { %3254 = vmatpush3.bf16.msra.mxu1 %v4335_v43 }
 0x1a0   : > { %3265 = vmatprep.subr.bf16.mxu1 %v3929_v27 }
 0x1a2   : > { %3250 = vmatmul.mubr.msk.bf16.vlgmr.msra.gmra.mxu0 %vm1122_vm1, %v4304_v56 }
 0x1a3   : > { %3261 = vmatprep.mubr.msk.bf16.mxu0 %vm3930_vm0, %v3929_v27  ;;  %3260 = vmatpush3.bf16.msra.mxu0 %v4333_v40 }
 0x1a4   : > { %3271 = vmatprep.subr.bf16.mxu0 %v3929_v27 }
 0x25a   : > { %v1163_v1 = vpop.f32.mrf.mxu0 }
 0x25b   : > { %v1218_v2 = vsel %vm1217_vm2, %v1163_v1, -inf }
 0x25c   : > { %1219 = vmax.xlane.f32.xlu0 %v1218_v2  ;;  %v3245_v3 = vpop.f32.mrf.mxu0 }
 0x25e   : > { %v1166_v4 = vpop.f32.mrf.mxu0 }
 0x25f   : > { %v1221_v5 = vsel %vm1217_vm2, %v1166_v4, -inf }
 0x260   : > { %1222 = vmax.xlane.f32.xlu0 %v1221_v5  ;;  %v3246_v6 = vpop.f32.mrf.mxu0 }
 0x262   : > { %v1210_v7 = vpop.f32.mrf.mxu0 }
 0x263   : > { %v1224_v8 = vsel %vm1217_vm2, %v1210_v7, -inf }
 0x264   : > { %1225 = vmax.xlane.f32.xlu1 %v1224_v8  ;;  %v3251_v9 = vpop.f32.mrf.mxu0 }
 0x266   : > { %v1213_v10 = vpop.f32.mrf.mxu0 }
 0x267   : > { %v1227_v11 = vsel %vm1217_vm2, %v1213_v10, -inf }
 0x268   : > { %1228 = vmax.xlane.f32.xlu1 %v1227_v11  ;;  %v3252_v12 = vpop.f32.mrf.mxu0 }
 0x2e5   : > { %v1220_v13 = vpop.xlane.xlu0 %1219 }
 0x2e6   : > { %v1230_v14 = vsub.f32 %v1163_v1, %v1220_v13 }
 0x2e8   : > { %v1234_v15 = vmul.f32 1.442695, %v1230_v14 }
 0x2e9   : > { %v1223_v16 = vpop.xlane.xlu0 %1222 }
 0x2ea   : > { %3566 = vpow2.f32 %v1234_v15  ;;  %v1231_v17 = vsub.f32 %v1166_v4, %v1223_v16 }
 0x2ec   : > { %v1236_v18 = vmul.f32 1.442695, %v1231_v17 }
 0x2ed   : > { %v1226_v19 = vpop.xlane.xlu1 %1225 }
 0x2ee   : > { %3568 = vpow2.f32 %v1236_v18  ;;  %v1232_v20 = vsub.f32 %v1210_v7, %v1226_v19 }
 0x2f0   : > { %v1238_v21 = vmul.f32 1.442695, %v1232_v20 }
 0x2f1   : > { %v1229_v29 = vpop.xlane.xlu1 %1228 }
 0x2f2   : > { %3570 = vpow2.f32 %v1238_v21  ;;  %v1233_v32 = vsub.f32 %v1213_v10, %v1229_v29 }
 0x2f4   : > { %v1240_v44 = vmul.f32 1.442695, %v1233_v32 }
 0x2f6   : > { %3572 = vpow2.f32 %v1240_v44 }
 0x2f7   : > { %v3567_v22 = vpop.eup %3566 }
 0x2f8   : > { %v1242_v23 = vsel %vm1217_vm2, %v3567_v22, 0.0 }
 0x2f9   : > { %1243 = vadd.xlane.f32.xlu0 %v1242_v23 }
 0x2fb   : > { %v3569_v24 = vpop.eup %3568 }
 0x2fc   : > { %v1245_v25 = vsel %vm1217_vm2, %v3569_v24, 0.0 }
 0x2fd   : > { %1246 = vadd.xlane.f32.xlu1 %v1245_v25 }
 0x2ff   : > { %v3571_v26 = vpop.eup %3570 }
 0x300   : > { %v1248_v28 = vsel %vm1217_vm2, %v3571_v26, 0.0 }
 0x301   : > { %1249 = vadd.xlane.f32.xlu0 %v1248_v28 }
 0x303   : > { %v3573_v45 = vpop.eup %3572 }
 0x304   : > { %v1251_v46 = vsel %vm1217_vm2, %v3573_v45, 0.0 }
 0x30e   : > { %1431 = vrot.lane.b32.xlu1 %v4295_v52, %s3931_s0 }
 0x317   : > { %1378 = vrot.lane.b32.xlu0 %v4287_v41, %s3931_s0 }
 0x332   : > { %1252 = vadd.xlane.f32.xlu1 %v1251_v46 }
 0x343   : > { %1375 = vrot.lane.b32.xlu1 %v4293_v51, %s3931_s0 }
 0x347   : > { %1428 = vrot.lane.b32.xlu1 %v4304_v56, %s3931_s0 }
 0x382   : > { %v1244_v47 = vpop.xlane.xlu0 %1243 }
 0x383   : > { %3574 = vrcp.f32 %v1244_v47 }
 0x386   : > { %v1247_v48 = vpop.xlane.xlu1 %1246 }
 0x387   : > { %3576 = vrcp.f32 %v1247_v48 }
 0x38a   : > { %v1250_v49 = vpop.xlane.xlu0 %1249  ;;  %v1432_v60 = vpop.permute.xlu1 %1431 }
 0x38b   : > { %3578 = vrcp.f32 %v1250_v49  ;;  %v1437_v4 = vsel %vm1122_vm1, %v1432_v60, 0 }
 0x38e   : > { %v1379_v57 = vpop.permute.xlu0 %1378 }
 0x38f   : > { %v1384_v59 = vsel %vm1122_vm1, %v1379_v57, 0 }
 0x390   : > { %v3575_v50 = vpop.eup %3574 }
 0x391   : > { %v1258_v54 = vmul.f32 %v3575_v50, %v3567_v22 }
 0x394   : > { %v3577_v53 = vpop.eup %3576 }
 0x395   : > { %v1259_v55 = vmul.f32 %v3577_v53, %v3569_v24 }
 0x397   : > { %v1262_v58 = vpack.c.bf16 %v1259_v55, %v1258_v54 }
 0x398   : > { %v3579_v63 = vpop.eup %3578 }
 0x399   : > { %3256 = vmatmul.mubr.msk.bf16.vlgmr.msra.gmra.mxu1 %vm1217_vm2, %v1262_v58  ;;  %v1260_v1 = vmul.f32 %v3579_v63, %v3571_v26 }
 0x39a   : > { %3266 = vmatpush3.bf16.xpose.msra.mxu1 %v1384_v59  ;;  %3267 = vmatprep.mubr.msk.bf16.mxu1 %vm3930_vm0, %v3929_v27 }
 0x39b   : > { %3277 = vmatprep.subr.bf16.mxu1 %v3929_v27 }
 0x3bb   : > { %v1253_v61 = vpop.xlane.xlu1 %1252 }
 0x3bc   : > { %3580 = vrcp.f32 %v1253_v61 }
 0x3bf   : > { %v1376_v62 = vpop.permute.xlu1 %1375 }
 0x3c0   : > { %3268 = vmatmul.mubr.msk.bf16.vlgmr.msra.gmra.mxu1 %vm1122_vm1, %v1376_v62 }
 0x3c1   : > { %3279 = vmatprep.mubr.msk.bf16.mxu1 %vm3930_vm0, %v3929_v27 }
 0x3c3   : > { %v1429_v5 = vpop.permute.xlu1 %1428 }
 0x3c9   : > { %v3581_v0 = vpop.eup %3580 }
 0x3ca   : > { %v1261_v2 = vmul.f32 %v3581_v0, %v3573_v45 }
 0x3cc   : > { %v1263_v3 = vpack.c.bf16 %v1261_v2, %v1260_v1 }
 0x3ce   : > { %3262 = vmatmul.mubr.msk.bf16.vlgmr.msra.gmra.mxu0 %vm1217_vm2, %v1263_v3 }
 0x3cf   : > { %3272 = vmatpush3.bf16.xpose.msra.mxu0 %v1437_v4  ;;  %3273 = vmatprep.mubr.msk.bf16.mxu0 %vm3930_vm0, %v3929_v27 }
 0x3d0   : > { %3283 = vmatprep.subr.bf16.mxu0 %v3929_v27 }
 0x3d6   : > { %3274 = vmatmul.mubr.msk.bf16.vlgmr.msra.gmra.mxu0 %vm1122_vm1, %v1429_v5 }
 0x3d7   : > { %3285 = vmatprep.mubr.msk.bf16.mxu0 %vm3930_vm0, %v3929_v27 }
 0x459   : > { %v1301_v6 = vpop.f32.mrf.mxu1 }
 0x45a   : > { %1352 = vst.msk [vmem:[#allocation4] sm:$0xff] %vm1122_vm1, %v1301_v6 }
 0x45b   : > { %v3257_v7 = vpop.f32.mrf.mxu1 }
 0x45d   : > { %v1304_v8 = vpop.f32.mrf.mxu1 }
 0x45e   : > { %1353 = vst.msk [vmem:[#allocation4 + $0x8] sm:$0xff] %vm1122_vm1, %v1304_v8 }
 0x45f   : > { %v3258_v9 = vpop.f32.mrf.mxu1 }
 0x480   : > { %v1420_v10 = vpop.f32.mrf.mxu1 }
 0x481   : > { %v1480_v11 = vsel %vm1217_vm2, %v1420_v10, -inf }
 0x482   : > { %1481 = vmax.xlane.f32.xlu0 %v1480_v11  ;;  %v3269_v12 = vpop.f32.mrf.mxu1 }
 0x484   : > { %v1423_v13 = vpop.f32.mrf.mxu1 }
 0x485   : > { %v1483_v14 = vsel %vm1217_vm2, %v1423_v13, -inf }
 0x486   : > { %1484 = vmax.xlane.f32.xlu1 %v1483_v14  ;;  %v3270_v15 = vpop.f32.mrf.mxu1 }
 0x48e   : > { %v1345_v16 = vpop.f32.mrf.mxu0 }
 0x48f   : > { %1354 = vst.msk [vmem:[#allocation4 + $0x10] sm:$0xff] %vm1122_vm1, %v1345_v16 }
 0x490   : > { %v3263_v17 = vpop.f32.mrf.mxu0 }
 0x492   : > { %v1348_v18 = vpop.f32.mrf.mxu0 }
 0x493   : > { %1355 = vst.msk [vmem:[#allocation4 + $0x18] sm:$0xff] %vm1122_vm1, %v1348_v18 }
 0x494   : > { %v3264_v19 = vpop.f32.mrf.mxu0 }
 0x496   : > { %v1473_v20 = vpop.f32.mrf.mxu0 }
 0x497   : > { %v1486_v21 = vsel %vm1217_vm2, %v1473_v20, -inf }
 0x498   : > { %1487 = vmax.xlane.f32.xlu0 %v1486_v21  ;;  %v3275_v22 = vpop.f32.mrf.mxu0 }
 0x49a   : > { %v1476_v23 = vpop.f32.mrf.mxu0 }
 0x49b   : > { %v1489_v24 = vsel %vm1217_vm2, %v1476_v23, -inf }
 0x49c   : > { %1490 = vmax.xlane.f32.xlu0 %v1489_v24  ;;  %v3276_v25 = vpop.f32.mrf.mxu0 }
 0x50b   : > { %v1482_v26 = vpop.xlane.xlu0 %1481 }
 0x50c   : > { %v1492_v28 = vsub.f32 %v1420_v10, %v1482_v26 }
 0x50e   : > { %v1496_v30 = vmul.f32 1.442695, %v1492_v28 }
 0x50f   : > { %v1485_v31 = vpop.xlane.xlu1 %1484 }
 0x510   : > { %3582 = vpow2.f32 %v1496_v30  ;;  %v1493_v33 = vsub.f32 %v1423_v13, %v1485_v31 }
 0x512   : > { %v1498_v34 = vmul.f32 1.442695, %v1493_v33 }
 0x514   : > { %3584 = vpow2.f32 %v1498_v34 }
 0x51d   : > { %v3583_v35 = vpop.eup %3582 }
 0x51e   : > { %v1504_v36 = vsel %vm1217_vm2, %v3583_v35, 0.0 }
 0x51f   : > { %1505 = vadd.xlane.f32.xlu0 %v1504_v36 }
 0x521   : > { %v3585_v37 = vpop.eup %3584  ;;  %v1488_v38 = vpop.xlane.xlu0 %1487 }
 0x522   : > { %v1494_v39 = vsub.f32 %v1473_v20, %v1488_v38  ;;  %v1507_v42 = vsel %vm1217_vm2, %v3585_v37, 0.0 }
 0x523   : > { %1508 = vadd.xlane.f32.xlu1 %v1507_v42 }
 0x524   : > { %v1500_v29 = vmul.f32 1.442695, %v1494_v39 }
 0x525   : > { %v1491_v45 = vpop.xlane.xlu0 %1490 }
 0x526   : > { %3586 = vpow2.f32 %v1500_v29  ;;  %v1495_v46 = vsub.f32 %v1476_v23, %v1491_v45 }
 0x528   : > { %v1502_v47 = vmul.f32 1.442695, %v1495_v46 }
 0x52a   : > { %3588 = vpow2.f32 %v1502_v47 }
 0x533   : > { %v3587_v32 = vpop.eup %3586 }
 0x534   : > { %1575 = vrot.lane.b32.xlu1 %v4333_v40, %s3931_s0  ;;  %v1510_v44 = vsel %vm1217_vm2, %v3587_v32, 0.0 }
 0x535   : > { %1511 = vadd.xlane.f32.xlu0 %v1510_v44 }
 0x537   : > { %v3589_v48 = vpop.eup %3588 }
 0x538   : > { %1665 = vrot.lane.b32.xlu1 %v4287_v41, %s3932_s7  ;;  %v1513_v49 = vsel %vm1217_vm2, %v3589_v48, 0.0 }
 0x54b   : > { %1527 = vrot.lane.b32.xlu0 %v4335_v43, %s3931_s0 }
 0x54f   : > { %1662 = vrot.lane.b32.xlu0 %v4293_v51, %s3932_s7 }
 0x55c   : > { %1514 = vadd.xlane.f32.xlu1 %v1513_v49 }
 0x56d   : > { %1718 = vrot.lane.b32.xlu1 %v4295_v52, %s3932_s7 }
 0x571   : > { %1715 = vrot.lane.b32.xlu1 %v4304_v56, %s3932_s7 }
 0x5a8   : > { %v1506_v53 = vpop.xlane.xlu0 %1505 }
 0x5ac   : > { %v1509_v50 = vpop.xlane.xlu1 %1508 }
 0x5ad   : > { %3590 = vrcp.f32 %v1509_v50 }
 0x5ae   : > { %3592 = vrcp.f32 %v1506_v53 }
 0x5b0   : > { %v1576_v54 = vpop.permute.xlu1 %1575 }
 0x5b1   : > { %3284 = vmatpush3.bf16.msra.mxu0 %v1576_v54 }
 0x5b2   : > { %3295 = vmatprep.subr.bf16.mxu0 %v3929_v27 }
 0x5b4   : > { %v1666_v62 = vpop.permute.xlu1 %1665 }
 0x5b5   : > { %v1671_v0 = vsel %vm1122_vm1, %v1666_v62, 0 }
 0x5ba   : > { %v3591_v55 = vpop.eup %3590 }
 0x5bb   : > { %v3593_v58 = vpop.eup %3592  ;;  %v1521_v59 = vmul.f32 %v3591_v55, %v3585_v37 }
 0x5bc   : > { %v1520_v61 = vmul.f32 %v3593_v58, %v3583_v35 }
 0x5be   : > { %v1512_v57 = vpop.xlane.xlu0 %1511  ;;  %v1524_v63 = vpack.c.bf16 %v1521_v59, %v1520_v61 }
 0x5bf   : > { %3594 = vrcp.f32 %v1512_v57 }
 0x5c2   : > { %v1528_v60 = vpop.permute.xlu0 %1527 }
 0x5c3   : > { %3278 = vmatpush3.bf16.msra.mxu1 %v1528_v60 }
 0x5c4   : > { %3289 = vmatprep.subr.bf16.mxu1 %v3929_v27 }
 0x5c6   : > { %3280 = vmatmul.mubr.msk.bf16.vlgmr.msra.gmra.mxu1 %vm1217_vm2, %v1524_v63  ;;  %v1663_v1 = vpop.permute.xlu0 %1662 }
 0x5c7   : > { %3290 = vmatpush3.bf16.xpose.msra.mxu1 %v1671_v0  ;;  %3291 = vmatprep.mubr.msk.bf16.mxu1 %vm3930_vm0, %v3929_v27 }
 0x5c8   : > { %3301 = vmatprep.subr.bf16.mxu1 %v3929_v27 }
 0x5cc   : > { %v3595_v3 = vpop.eup %3594 }
 0x5cd   : > { %v1522_v5 = vmul.f32 %v3595_v3, %v3587_v32 }
 0x5ce   : > { %3292 = vmatmul.mubr.msk.bf16.vlgmr.msra.gmra.mxu1 %vm1122_vm1, %v1663_v1 }
 0x5cf   : > { %3303 = vmatprep.mubr.msk.bf16.mxu1 %vm3930_vm0, %v3929_v27 }
 0x5e5   : > { %v1515_v2 = vpop.xlane.xlu1 %1514 }
 0x5e6   : > { %3596 = vrcp.f32 %v1515_v2 }
 0x5e9   : > { %v1719_v7 = vpop.permute.xlu1 %1718 }
 0x5ea   : > { %v1724_v9 = vsel %vm1122_vm1, %v1719_v7, 0 }
 0x5ed   : > { %v1716_v10 = vpop.permute.xlu1 %1715 }
 0x5f3   : > { %v3597_v4 = vpop.eup %3596 }
 0x5f4   : > { %v1523_v6 = vmul.f32 %v3597_v4, %v3589_v48 }
 0x5f6   : > { %v1525_v8 = vpack.c.bf16 %v1523_v6, %v1522_v5 }
 0x5f8   : > { %3286 = vmatmul.mubr.msk.bf16.vlgmr.msra.gmra.mxu0 %vm1217_vm2, %v1525_v8 }
 0x5f9   : > { %3296 = vmatpush3.bf16.xpose.msra.mxu0 %v1724_v9  ;;  %3297 = vmatprep.mubr.msk.bf16.mxu0 %vm3930_vm0, %v3929_v27 }
 0x5fa   : > { %3307 = vmatprep.subr.bf16.mxu0 %v3929_v27 }
 0x600   : > { %3298 = vmatmul.mubr.msk.bf16.vlgmr.msra.gmra.mxu0 %vm1122_vm1, %v1716_v10 }
 0x601   : > { %3309 = vmatprep.mubr.msk.bf16.mxu0 %vm3930_vm0, %v3929_v27 }
 0x686   : > { %v4406_v11 = vpop.f32.mrf.mxu1 }
 0x688   : > { %v3281_v12 = vpop.f32.mrf.mxu1 }
 0x68a   : > { %v4408_v13 = vpop.f32.mrf.mxu1 }
 0x68c   : > { %v3282_v14 = vpop.f32.mrf.mxu1 }
 0x68e   : > { %v1707_v15 = vpop.f32.mrf.mxu1 }
 0x68f   : > { %v1767_v16 = vsel %vm1217_vm2, %v1707_v15, -inf }
 0x690   : > { %1768 = vmax.xlane.f32.xlu0 %v1767_v16  ;;  %v3293_v17 = vpop.f32.mrf.mxu1 }
 0x692   : > { %v1710_v18 = vpop.f32.mrf.mxu1 }
 0x693   : > { %v1770_v19 = vsel %vm1217_vm2, %v1710_v18, -inf }
 0x694   : > { %1771 = vmax.xlane.f32.xlu1 %v1770_v19  ;;  %v3294_v20 = vpop.f32.mrf.mxu1 }
 0x6b8   : > { %v4412_v21 = vpop.f32.mrf.mxu0 }
 0x6ba   : > { %v3287_v22 = vpop.f32.mrf.mxu0 }
 0x6bc   : > { %v4414_v23 = vpop.f32.mrf.mxu0 }
 0x6be   : > { %v3288_v24 = vpop.f32.mrf.mxu0 }
 0x6c0   : > { %v1760_v25 = vpop.f32.mrf.mxu0 }
 0x6c1   : > { %v1773_v26 = vsel %vm1217_vm2, %v1760_v25, -inf }
 0x6c2   : > { %1774 = vmax.xlane.f32.xlu0 %v1773_v26  ;;  %v3299_v28 = vpop.f32.mrf.mxu0 }
 0x6c4   : > { %v1763_v30 = vpop.f32.mrf.mxu0 }
 0x6c5   : > { %v1776_v31 = vsel %vm1217_vm2, %v1763_v30, -inf }
 0x6c6   : > { %1777 = vmax.xlane.f32.xlu0 %v1776_v31  ;;  %v3300_v33 = vpop.f32.mrf.mxu0 }
 0x719   : > { %v1769_v34 = vpop.xlane.xlu0 %1768 }
 0x71a   : > { %v1779_v35 = vsub.f32 %v1707_v15, %v1769_v34 }
 0x71c   : > { %v1783_v36 = vmul.f32 1.442695, %v1779_v35 }
 0x71d   : > { %v1772_v37 = vpop.xlane.xlu1 %1771 }
 0x71e   : > { %3598 = vpow2.f32 %v1783_v36  ;;  %v1780_v38 = vsub.f32 %v1710_v18, %v1772_v37 }
 0x720   : > { %v1785_v39 = vmul.f32 1.442695, %v1780_v38 }
 0x722   : > { %3600 = vpow2.f32 %v1785_v39 }
 0x72b   : > { %v3599_v42 = vpop.eup %3598 }
 0x72c   : > { %v1791_v29 = vsel %vm1217_vm2, %v3599_v42, 0.0 }
 0x72d   : > { %1792 = vadd.xlane.f32.xlu0 %v1791_v29 }
 0x72f   : > { %v3601_v32 = vpop.eup %3600 }
 0x730   : > { %v1794_v44 = vsel %vm1217_vm2, %v3601_v32, 0.0 }
 0x731   : > { %1795 = vadd.xlane.f32.xlu1 %v1794_v44 }
 0x742   : > { %1862 = vrot.lane.b32.xlu1 %v4333_v40, %s3932_s7 }
 0x746   : > { %1952 = vrot.lane.b32.xlu1 %v4287_v41, %s3933_s9 }
 0x74b   : > { %v1775_v45 = vpop.xlane.xlu0 %1774 }
 0x74c   : > { %v1781_v46 = vsub.f32 %v1760_v25, %v1775_v45 }
 0x74e   : > { %v1787_v47 = vmul.f32 1.442695, %v1781_v46 }
 0x74f   : > { %v1778_v48 = vpop.xlane.xlu0 %1777 }
 0x750   : > { %3602 = vpow2.f32 %v1787_v47  ;;  %v1782_v49 = vsub.f32 %v1763_v30, %v1778_v48 }
 0x752   : > { %v1789_v50 = vmul.f32 1.442695, %v1782_v49 }
 0x754   : > { %3604 = vpow2.f32 %v1789_v50 }
 0x75d   : > { %v3603_v53 = vpop.eup %3602 }
 0x75e   : > { %v1797_v54 = vsel %vm1217_vm2, %v3603_v53, 0.0 }
 0x75f   : > { %1798 = vadd.xlane.f32.xlu0 %v1797_v54 }
 0x761   : > { %v3605_v55 = vpop.eup %3604 }
 0x762   : > { %v1800_v57 = vsel %vm1217_vm2, %v3605_v55, 0.0 }
 0x76a   : > { %1801 = vadd.xlane.f32.xlu1 %v1800_v57 }
 0x775   : > { %1814 = vrot.lane.b32.xlu0 %v4335_v43, %s3932_s7 }
 0x779   : > { %1949 = vrot.lane.b32.xlu0 %v4293_v51, %s3933_s9 }
 0x77b   : > { %2005 = vrot.lane.b32.xlu1 %v4295_v52, %s3933_s9 }
 0x77f   : > { %2002 = vrot.lane.b32.xlu1 %v4304_v56, %s3933_s9 }
 0x7b6   : > { %v1793_v59 = vpop.xlane.xlu0 %1792 }
 0x7ba   : > { %v1796_v41 = vpop.xlane.xlu1 %1795 }
 0x7bb   : > { %3606 = vrcp.f32 %v1796_v41 }
 0x7bc   : > { %3608 = vrcp.f32 %v1793_v59 }
 0x7be   : > { %v1863_v58 = vpop.permute.xlu1 %1862 }
 0x7bf   : > { %3308 = vmatpush3.bf16.msra.mxu0 %v1863_v58 }
 0x7c0   : > { %3319 = vmatprep.subr.bf16.mxu0 %v3929_v27 }
 0x7c2   : > { %v1953_v1 = vpop.permute.xlu1 %1952 }
 0x7c3   : > { %v1958_v56 = vsel %vm1122_vm1, %v1953_v1, 0 }
 0x7c8   : > { %v3607_v60 = vpop.eup %3606 }
 0x7c9   : > { %v3609_v62 = vpop.eup %3608  ;;  %v1808_v63 = vmul.f32 %v3607_v60, %v3601_v32 }
 0x7ca   : > { %v1807_v51 = vmul.f32 %v3609_v62, %v3599_v42 }
 0x7cc   : > { %v1811_v52 = vpack.c.bf16 %v1808_v63, %v1807_v51 }
 0x7e8   : > { %v1799_v61 = vpop.xlane.xlu0 %1798 }
 0x7e9   : > { %3610 = vrcp.f32 %v1799_v61 }
 0x7ec   : > { %v1815_v0 = vpop.permute.xlu0 %1814 }
 0x7ed   : > { %3302 = vmatpush3.bf16.msra.mxu1 %v1815_v0 }
 0x7ee   : > { %3313 = vmatprep.subr.bf16.mxu1 %v3929_v27 }
 0x7f0   : > { %3304 = vmatmul.mubr.msk.bf16.vlgmr.msra.gmra.mxu1 %vm1217_vm2, %v1811_v52  ;;  %v1950_v3 = vpop.permute.xlu0 %1949 }
 0x7f1   : > { %3314 = vmatpush3.bf16.xpose.msra.mxu1 %v1958_v56  ;;  %3315 = vmatprep.mubr.msk.bf16.mxu1 %vm3930_vm0, %v3929_v27 }
 0x7f2   : > { %3325 = vmatprep.subr.bf16.mxu1 %v3929_v27 }
 0x7f3   : > { %v1802_v2 = vpop.xlane.xlu1 %1801 }
 0x7f4   : > { %3612 = vrcp.f32 %v1802_v2 }
 0x7f6   : > { %v3611_v4 = vpop.eup %3610 }
 0x7f7   : > { %v1809_v6 = vmul.f32 %v3611_v4, %v3603_v53  ;;  %v2006_v8 = vpop.permute.xlu1 %2005 }
 0x7f8   : > { %3316 = vmatmul.mubr.msk.bf16.vlgmr.msra.gmra.mxu1 %vm1122_vm1, %v1950_v3  ;;  %v2011_v10 = vsel %vm1122_vm1, %v2006_v8, 0 }
 0x7f9   : > { %3327 = vmatprep.mubr.msk.bf16.mxu1 %vm3930_vm0, %v3929_v27 }
 0x7fb   : > { %v2003_v12 = vpop.permute.xlu1 %2002 }
 0x801   : > { %v3613_v5 = vpop.eup %3612 }
 0x802   : > { %v1810_v7 = vmul.f32 %v3613_v5, %v3605_v55 }
 0x804   : > { %v1812_v9 = vpack.c.bf16 %v1810_v7, %v1809_v6 }
 0x806   : > { %3310 = vmatmul.mubr.msk.bf16.vlgmr.msra.gmra.mxu0 %vm1217_vm2, %v1812_v9 }
 0x807   : > { %3320 = vmatpush3.bf16.xpose.msra.mxu0 %v2011_v10  ;;  %3321 = vmatprep.mubr.msk.bf16.mxu0 %vm3930_vm0, %v3929_v27 }
 0x808   : > { %3331 = vmatprep.subr.bf16.mxu0 %v3929_v27 }
 0x80e   : > { %3322 = vmatmul.mubr.msk.bf16.vlgmr.msra.gmra.mxu0 %vm1122_vm1, %v2003_v12 }
 0x80f   : > { %3333 = vmatprep.mubr.msk.bf16.mxu0 %vm3930_vm0, %v3929_v27 }
 0x8b0   : > { %v1854_v14 = vpop.f32.mrf.mxu1 }
 0x8b2   : > { %v3305_v15 = vpop.f32.mrf.mxu1 }
 0x8b3   : > { %v3543_v15 = vld [vmem:[%s4210_s16 + $0x30] sm:$0xff]  }
 0x8b4   : > { %v1857_v16 = vpop.f32.mrf.mxu1 }
 0x8b6   : > { %v3306_v17 = vpop.f32.mrf.mxu1 }
 0x8b7   : > { %v3545_v17 = vld [vmem:[%s4210_s16 + $0x20] sm:$0xff]  }
 0x8b8   : > { %v1994_v18 = vpop.f32.mrf.mxu1 }
 0x8b9   : > { %v2054_v19 = vsel %vm1217_vm2, %v1994_v18, -inf }
 0x8ba   : > { %2055 = vmax.xlane.f32.xlu0 %v2054_v19  ;;  %v3317_v20 = vpop.f32.mrf.mxu1 }
 0x8bc   : > { %v1997_v22 = vpop.f32.mrf.mxu1 }
 0x8bd   : > { %v2057_v24 = vsel %vm1217_vm2, %v1997_v22, -inf }
 0x8be   : > { %2058 = vmax.xlane.f32.xlu1 %v2057_v24  ;;  %v3318_v25 = vpop.f32.mrf.mxu1 }
 0x8c6   : > { %v1902_v26 = vpop.f32.mrf.mxu0 }
 0x8c8   : > { %v3311_v28 = vpop.f32.mrf.mxu0 }
 0x8c9   : > { %v3549_v28 = vld [vmem:[%s4210_s16] sm:$0xff]  }
 0x8ca   : > { %v1905_v30 = vpop.f32.mrf.mxu0 }
 0x8cc   : > { %v3312_v31 = vpop.f32.mrf.mxu0 }
 0x8ce   : > { %v2047_v33 = vpop.f32.mrf.mxu0 }
 0x8cf   : > { %v2060_v27 = vsel %vm1217_vm2, %v2047_v33, -inf }
 0x8d0   : > { %2061 = vmax.xlane.f32.xlu0 %v2060_v27  ;;  %v3323_v34 = vpop.f32.mrf.mxu0 }
 0x8d2   : > { %v2050_v35 = vpop.f32.mrf.mxu0 }
 0x8d3   : > { %v2063_v36 = vsel %vm1217_vm2, %v2050_v35, -inf }
 0x8d4   : > { %2064 = vmax.xlane.f32.xlu0 %v2063_v36  ;;  %v3324_v37 = vpop.f32.mrf.mxu0 }
 0x943   : > { %v2056_v38 = vpop.xlane.xlu0 %2055 }
 0x944   : > { %v2066_v39 = vsub.f32 %v1994_v18, %v2056_v38  ;;  %v3546_v18 = vld [vmem:[%s4210_s16 + $0x18] sm:$0xff]  }
 0x946   : > { %v2070_v42 = vmul.f32 1.442695, %v2066_v39 }
 0x947   : > { %v2059_v29 = vpop.xlane.xlu1 %2058 }
 0x948   : > { %3614 = vpow2.f32 %v2070_v42  ;;  %v2067_v32 = vsub.f32 %v1997_v22, %v2059_v29  ;;  %v3547_v22 = vld [vmem:[%s4210_s16 + $0x10] sm:$0xff]  }
 0x94a   : > { %v2072_v44 = vmul.f32 1.442695, %v2067_v32 }
 0x94c   : > { %3616 = vpow2.f32 %v2072_v44 }
 0x955   : > { %v3615_v45 = vpop.eup %3614 }
 0x956   : > { %v2078_v46 = vsel %vm1217_vm2, %v3615_v45, 0.0 }
 0x957   : > { %2079 = vadd.xlane.f32.xlu0 %v2078_v46  ;;  %v3108_v46 = vld [vmem:[%s4674_s30] ss:$0 sm:$0xff] }
 0x959   : > { %v3617_v47 = vpop.eup %3616  ;;  %v2062_v48 = vpop.xlane.xlu0 %2061 }
 0x95a   : > { %v2068_v49 = vsub.f32 %v2047_v33, %v2062_v48  ;;  %v2081_v50 = vsel %vm1217_vm2, %v3617_v47, 0.0 }
 0x95b   : > { %2082 = vadd.xlane.f32.xlu1 %v2081_v50 }
 0x95c   : > { %v2074_v53 = vmul.f32 1.442695, %v2068_v49 }
 0x95d   : > { %v2065_v54 = vpop.xlane.xlu0 %2064 }
 0x95e   : > { %3618 = vpow2.f32 %v2074_v53  ;;  %v2069_v55 = vsub.f32 %v2050_v35, %v2065_v54  ;;  %v3646_v53 = vld [vmem:[#allocation2 + $0x10] sm:$0xff] }
 0x960   : > { %v2076_v57 = vmul.f32 1.442695, %v2069_v55 }
 0x962   : > { %3620 = vpow2.f32 %v2076_v57 }
 0x96b   : > { %v3619_v41 = vpop.eup %3618 }
 0x96c   : > { %v2084_v58 = vsel %vm1217_vm2, %v3619_v41, 0.0 }
 0x96d   : > { %2085 = vadd.xlane.f32.xlu0 %v2084_v58  ;;  %v3647_v58 = vld [vmem:[#allocation2] sm:$0xff] }
 0x96f   : > { %v3621_v59 = vpop.eup %3620 }
 0x970   : > { %v2087_v60 = vsel %vm1217_vm2, %v3621_v59, 0.0 }
 0x971   : > { %2088 = vadd.xlane.f32.xlu1 %v2087_v60  ;;  %v3648_v60 = vld [vmem:[#allocation2 + $0x18] sm:$0xff] }
 0x982   : > { %2149 = vrot.lane.b32.xlu1 %v4333_v40, %s3933_s9 }
 0x983   : > { %2101 = vrot.lane.b32.xlu0 %v4335_v43, %s3933_s9 }
 0x986   : > { %1626 = vrot.lane.b32.xlu1 %v4406_v11, %s3933_s9 }
 0x987   : > { %1630 = vrot.lane.b32.xlu0 %v4412_v21, %s3933_s9 }
 0x98a   : > { %1628 = vrot.lane.b32.xlu1 %v4408_v13, %s3933_s9 }
 0x98b   : > { %1913 = vrot.lane.b32.xlu0 %v1854_v14, %s3932_s7  ;;  %v3542_v14 = vld [vmem:[%s4210_s16 + $0x38] sm:$0xff]  }
 0x98e   : > { %1632 = vrot.lane.b32.xlu1 %v4414_v23, %s3933_s9 }
 0x98f   : > { %1917 = vrot.lane.b32.xlu0 %v1902_v26, %s3932_s7  ;;  %v3548_v26 = vld [vmem:[%s4210_s16 + $0x8] sm:$0xff]  }
 0x992   : > { %1915 = vrot.lane.b32.xlu1 %v1857_v16, %s3932_s7  ;;  %v3544_v16 = vld [vmem:[%s4210_s16 + $0x28] sm:$0xff]  }
 0x996   : > { %1919 = vrot.lane.b32.xlu1 %v1905_v30, %s3932_s7 }
 0x9e0   : > { %v2080_v43 = vpop.xlane.xlu0 %2079 }
 0x9e4   : > { %v2083_v40 = vpop.xlane.xlu1 %2082 }
 0x9e5   : > { %3622 = vrcp.f32 %v2083_v40 }
 0x9e6   : > { %3624 = vrcp.f32 %v2080_v43  ;;  %v3649_v43 = vld [vmem:[#allocation2 + $0x8] sm:$0xff] }
 0x9f2   : > { %v3623_v11 = vpop.eup %3622 }
 0x9f3   : > { %v3625_v61 = vpop.eup %3624  ;;  %v2095_v62 = vmul.f32 %v3623_v11, %v3617_v47 }
 0x9f4   : > { %v2094_v0 = vmul.f32 %v3625_v61, %v3615_v45 }
 0x9f6   : > { %v2086_v21 = vpop.xlane.xlu0 %2085  ;;  %v2098_v23 = vpack.c.bf16 %v2095_v62, %v2094_v0 }
 0x9f7   : > { %3626 = vrcp.f32 %v2086_v21 }
 0x9fa   : > { %v2089_v13 = vpop.xlane.xlu1 %2088  ;;  %v2102_v63 = vpop.permute.xlu0 %2101 }
 0x9fb   : > { %3628 = vrcp.f32 %v2089_v13  ;;  %3326 = vmatpush3.bf16.msra.mxu1 %v2102_v63 }
 0x9fc   : > { %3337 = vmatprep.subr.bf16.mxu1 %v3542_v14 }
 0x9fe   : > { %v2150_v51 = vpop.permute.xlu1 %2149  ;;  %3328 = vmatmul.mubr.msk.bf16.vlgmr.msra.gmra.mxu1 %vm1217_vm2, %v2098_v23  ;;  %v1631_v1 = vpop.permute.xlu0 %1630 }
 0x9ff   : > { %1641 = vst.msk [vmem:[#allocation4 + $0x10] sm:$0xff] %vm1638_vm3, %v1631_v1  ;;  %3332 = vmatpush3.bf16.msra.mxu0 %v2150_v51  ;;  %3338 = vmatpush3.bf16.msra.mxu1 %v3542_v14  ;;  %v3555_v14 = vld [vmem:[%s4216_s23 + $0x10] sm:$0xff]  }
 0xa00   : > { %3339 = vmatprep.subr.bf16.mxu1 %v3543_v15 }
 0xa02   : > { %v1627_v52 = vpop.permute.xlu1 %1626  ;;  %v1914_v56 = vpop.permute.xlu0 %1913 }
 0xa03   : > { %1639 = vst.msk [vmem:[#allocation4] sm:$0xff] %vm1638_vm3, %v1627_v52  ;;  %3340 = vmatpush3.bf16.msra.mxu1 %v3543_v15  ;;  %v3556_v15 = vld [vmem:[%s4216_s23 + $0x8] sm:$0xff]  }
 0xa04   : > { %1926 = vst.msk [vmem:[#allocation4] sm:$0xff] %vm1925_vm4, %v1914_v56  ;;  %v3627_v2 = vpop.eup %3626  ;;  %3341 = vmatprep.subr.bf16.mxu1 %v3544_v16 }
 0xa05   : > { %v2096_v6 = vmul.f32 %v3627_v2, %v3619_v41 }
 0xa06   : > { %v1629_v3 = vpop.permute.xlu1 %1628  ;;  %v1918_v4 = vpop.permute.xlu0 %1917 }
 0xa07   : > { %1640 = vst.msk [vmem:[#allocation4 + $0x8] sm:$0xff] %vm1638_vm3, %v1629_v3  ;;  %3342 = vmatpush3.bf16.msra.mxu1 %v3544_v16  ;;  %v3557_v16 = vld [vmem:[%s4216_s23] sm:$0xff]  }
 0xa08   : > { %1928 = vst.msk [vmem:[#allocation4 + $0x10] sm:$0xff] %vm1925_vm4, %v1918_v4  ;;  %v3629_v5 = vpop.eup %3628  ;;  %3343 = vmatprep.subr.bf16.mxu1 %v3545_v17 }
 0xa09   : > { %v2097_v7 = vmul.f32 %v3629_v5, %v3621_v59 }
 0xa0a   : > { %v1633_v8 = vpop.permute.xlu1 %1632 }
 0xa0b   : > { %1642 = vst.msk [vmem:[#allocation4 + $0x18] sm:$0xff] %vm1638_vm3, %v1633_v8  ;;  %v2099_v9 = vpack.c.bf16 %v2097_v7, %v2096_v6  ;;  %3344 = vmatpush3.bf16.msra.mxu1 %v3545_v17  ;;  %v3550_v7 = vld [vmem:[%s4216_s23 + $0x38] sm:$0xff]   ;;  %v3551_v8 = vld [vmem:[%s4216_s23 + $0x30] sm:$0xff]  }
 0xa0c   : > { %3345 = vmatprep.subr.bf16.mxu1 %v3546_v18  ;;  %3357 = vmatprep.subr.bf16.mxu0 %v3550_v7  ;;  %v3558_v17 = vld [vmem:[%s4218_s24 + $0x38] sm:$0xff]  }
 0xa0d   : > { %3334 = vmatmul.mubr.msk.bf16.vlgmr.msra.gmra.mxu0 %vm1217_vm2, %v2099_v9  ;;  %v3552_v9 = vld [vmem:[%s4216_s23 + $0x28] sm:$0xff]  }
 0xa0e   : > { %v1916_v10 = vpop.permute.xlu1 %1915  ;;  %3358 = vmatpush3.bf16.msra.mxu0 %v3550_v7  ;;  %v3128_v7 = vld [vmem:[%s786_s1] ss:$0 sm:$0xff] }
 0xa0f   : > { %1927 = vst.msk [vmem:[#allocation4 + $0x8] sm:$0xff] %vm1925_vm4, %v1916_v10  ;;  %3346 = vmatpush3.bf16.msra.mxu1 %v3546_v18  ;;  %3359 = vmatprep.subr.bf16.mxu0 %v3551_v8  ;;  %v3553_v10 = vld [vmem:[%s4216_s23 + $0x20] sm:$0xff]   ;;  %v3559_v18 = vld [vmem:[%s4218_s24 + $0x30] sm:$0xff]  }
 0xa10   : > { %3347 = vmatprep.subr.bf16.mxu1 %v3547_v22 }
 0xa12   : > { %v1920_v12 = vpop.permute.xlu1 %1919  ;;  %3360 = vmatpush3.bf16.msra.mxu0 %v3551_v8 }
 0xa13   : > { %1929 = vst.msk [vmem:[#allocation4 + $0x18] sm:$0xff] %vm1925_vm4, %v1920_v12  ;;  %3348 = vmatpush3.bf16.msra.mxu1 %v3547_v22  ;;  %3361 = vmatprep.subr.bf16.mxu0 %v3552_v9  ;;  %v3554_v12 = vld [vmem:[%s4216_s23 + $0x18] sm:$0xff]  }
 0xa14   : > { %3349 = vmatprep.subr.bf16.mxu1 %v3548_v26  ;;  %v3562_v22 = vld [vmem:[%s4218_s24 + $0x18] sm:$0xff]  }
 0xa16   : > { %3362 = vmatpush3.bf16.msra.mxu0 %v3552_v9 }
 0xa17   : > { %3350 = vmatpush3.bf16.msra.mxu1 %v3548_v26  ;;  %3363 = vmatprep.subr.bf16.mxu0 %v3553_v10 }
 0xa18   : > { %3351 = vmatprep.subr.bf16.mxu1 %v3549_v28 }
 0xa1a   : > { %3364 = vmatpush3.bf16.msra.mxu0 %v3553_v10 }
 0xa1b   : > { %3352 = vmatpush3.bf16.msra.mxu1 %v3549_v28  ;;  %3365 = vmatprep.subr.bf16.mxu0 %v3554_v12 }
 0xa1c   : > { %3377 = vmatprep.subr.bf16.mxu1 %v3558_v17 }
 0xa1e   : > { %3366 = vmatpush3.bf16.msra.mxu0 %v3554_v12 }
 0xa1f   : > { %3367 = vmatprep.subr.bf16.mxu0 %v3555_v14 }
 0xa22   : > { %3368 = vmatpush3.bf16.msra.mxu0 %v3555_v14 }
 0xa23   : > { %3369 = vmatprep.subr.bf16.mxu0 %v3556_v15 }
 0xa26   : > { %3370 = vmatpush3.bf16.msra.mxu0 %v3556_v15 }
 0xa27   : > { %3371 = vmatprep.subr.bf16.mxu0 %v3557_v16 }
 0xa2a   : > { %3372 = vmatpush3.bf16.msra.mxu0 %v3557_v16 }
 0xabe   : > { %v2141_v19 = vpop.f32.mrf.mxu1 }
 0xabf   : > { %2200 = vrot.lane.b32.xlu0 %v2141_v19, %s3931_s0  ;;  %v3560_v19 = vld [vmem:[%s4218_s24 + $0x28] sm:$0xff]  }
 0xac0   : > { %v3329_v20 = vpop.f32.mrf.mxu1 }
 0xac1   : > { %v3561_v20 = vld [vmem:[%s4218_s24 + $0x20] sm:$0xff]  }
 0xac2   : > { %v2144_v24 = vpop.f32.mrf.mxu1 }
 0xac3   : > { %2202 = vrot.lane.b32.xlu1 %v2144_v24, %s3931_s0 }
 0xac4   : > { %v3330_v25 = vpop.f32.mrf.mxu1 }
 0xacd   : > { %v2189_v30 = vpop.f32.mrf.mxu0 }
 0xace   : > { %2204 = vrot.lane.b32.xlu0 %v2189_v30, %s3931_s0 }
 0xacf   : > { %v3335_v31 = vpop.f32.mrf.mxu0 }
 0xad1   : > { %v2192_v33 = vpop.f32.mrf.mxu0 }
 0xad2   : > { %2206 = vrot.lane.b32.xlu1 %v2192_v33, %s3931_s0  ;;  %s4682_s0 = sld [smem:[#allocation41_spill]] (!%p3139_p11) }
 0xad3   : > { %v3336_v27 = vpop.f32.mrf.mxu0 }
 0xb31   : > { %v2201_v34 = vpop.permute.xlu0 %2200 }
 0xb32   : > { %2213 = vst.msk [vmem:[#allocation4] sm:$0xff] %vm2212_vm5, %v2201_v34 }
 0xb35   : > { %v2203_v35 = vpop.permute.xlu1 %2202 }
 0xb36   : > { %2214 = vst.msk [vmem:[#allocation4 + $0x8] sm:$0xff] %vm2212_vm5, %v2203_v35 }
 0xb39   : > { %v2217_v36 = vld [vmem:[#allocation4] sm:$0xff] }
 0xb3d   : > { %v2218_v37 = vld [vmem:[#allocation4 + $0x8] sm:$0xff] }
 0xb3e   : > { %v2221_v38 = vpack.c.bf16 %v2218_v37, %v2217_v36 }
 0xb40   : > { %3353 = vmatprep.mubr.bf16.mxu1 %v2221_v38  ;;  %v2205_v39 = vpop.permute.xlu0 %2204 }
 0xb41   : > { %2215 = vst.msk [vmem:[#allocation4 + $0x10] sm:$0xff] %vm2212_vm5, %v2205_v39 }
 0xb44   : > { %v2207_v42 = vpop.permute.xlu1 %2206 }
 0xb45   : > { %2216 = vst.msk [vmem:[#allocation4 + $0x18] sm:$0xff] %vm2212_vm5, %v2207_v42  ;;  %v3117_v42 = vld [vmem:[%s777_s22] ss:$0 sm:$0xff] }
 0xb48   : > { %v2219_v29 = vld [vmem:[#allocation4 + $0x10] sm:$0xff] }
 0xb4c   : > { %v2220_v32 = vld [vmem:[#allocation4 + $0x18] sm:$0xff] }
 0xb4d   : > { %v2222_v44 = vpack.c.bf16 %v2220_v32, %v2219_v29 }
 0xb4f   : > { %3354 = vmatmul.mubr.bf16.vlgmr.msra.gmra.mxu1 %v2222_v44 }
 0xb50   : > { %3378 = vmatpush3.bf16.msra.mxu1 %v3558_v17 }
 0xb51   : > { %3379 = vmatprep.subr.bf16.mxu1 %v3559_v18 }
 0xb54   : > { %3380 = vmatpush3.bf16.msra.mxu1 %v3559_v18 }
 0xb55   : > { %3381 = vmatprep.subr.bf16.mxu1 %v3560_v19 }
 0xb58   : > { %3382 = vmatpush3.bf16.msra.mxu1 %v3560_v19 }
 0xb59   : > { %3383 = vmatprep.subr.bf16.mxu1 %v3561_v20 }
 0xb5c   : > { %3384 = vmatpush3.bf16.msra.mxu1 %v3561_v20 }
 0xb5d   : > { %3385 = vmatprep.subr.bf16.mxu1 %v3562_v22 }
 0xb60   : > { %3386 = vmatpush3.bf16.msra.mxu1 %v3562_v22 }
 0xc0f   : > { %v3355_v45 = vpop.f32.mrf.mxu1 }
 0xc10   : > { %v2337_v50 = vadd.f32 %v3355_v45, %v3108_v46 }
 0xc11   : > { %v2328_v47 = vpop.f32.mrf.mxu1 }
 0xc12   : > { %v2329_v48 = vadd.f32 %v3108_v46, %v2328_v47  ;;  %v2345_v40 = vadd.f32 %v3648_v60, %v2337_v50 }
 0xc13   : > { %v3356_v49 = vpop.f32.mrf.mxu1 }
 0xc14   : > { %v2343_v54 = vadd.f32 %v3646_v53, %v2329_v48  ;;  %v2340_v41 = vadd.f32 %v3356_v49, %v3108_v46 }
 0xc15   : > { %v2331_v55 = vpop.f32.mrf.mxu1 }
 0xc16   : > { %v2332_v57 = vadd.f32 %v3108_v46, %v2331_v55  ;;  %2349 = vadd.xlane.f32.xlu0 %v2343_v54  ;;  %v2346_v11 = vadd.f32 %v3649_v43, %v2340_v41  ;;  %v3118_v46 = vld [vmem:[%s780_s2] ss:$0 sm:$0xff]  ;;  %v3564_v43 = vld [vmem:[%s4218_s24 + $0x8] sm:$0xff]  }
 0xc18   : > { %v2344_v59 = vadd.f32 %v3647_v58, %v2332_v57 }
 0xc1a   : > { %2351 = vadd.xlane.f32.xlu1 %v2344_v59  ;;  %2353 = vadd.xlane.f32.xlu0 %v2345_v40 }
 0xc1e   : > { %2355 = vadd.xlane.f32.xlu0 %v2346_v11 }
 0xc9f   : > { %v2350_v21 = vpop.xlane.xlu0 %2349 }
 0xca0   : > { %v2358_v61 = vmul.f32 0.0078125, %v2350_v21 }
 0xca2   : > { %v4503_v62 = vsub.f32 %v2343_v54, %v2358_v61 }
 0xca3   : > { %v2352_v13 = vpop.xlane.xlu1 %2351  ;;  %v2354_v63 = vpop.xlane.xlu0 %2353 }
 0xca4   : > { %v2359_v0 = vmul.f32 0.0078125, %v2352_v13  ;;  %v2360_v23 = vmul.f32 0.0078125, %v2354_v63  ;;  %v2366_v51 = vmul.f32 %v4503_v62, %v4503_v62 }
 0xca6   : > { %v4507_v1 = vsub.f32 %v2344_v59, %v2359_v0  ;;  %v4509_v52 = vsub.f32 %v2345_v40, %v2360_v23  ;;  %2370 = vadd.xlane.f32.xlu0 %v2366_v51  ;;  %v3563_v40 = vld [vmem:[%s4218_s24 + $0x10] sm:$0xff]  }
 0xca7   : > { %v2356_v56 = vpop.xlane.xlu0 %2355  ;;  %3387 = vmatprep.subr.bf16.mxu1 %v3563_v40 }
 0xca8   : > { %v2361_v2 = vmul.f32 0.0078125, %v2356_v56  ;;  %v2367_v3 = vmul.f32 %v4507_v1, %v4507_v1  ;;  %v2368_v4 = vmul.f32 %v4509_v52, %v4509_v52  ;;  %3388 = vmatpush3.bf16.msra.mxu1 %v3563_v40 }
 0xca9   : > { %3389 = vmatprep.subr.bf16.mxu1 %v3564_v43 }
 0xcaa   : > { %v4515_v5 = vsub.f32 %v2346_v11, %v2361_v2  ;;  %2372 = vadd.xlane.f32.xlu1 %v2367_v3  ;;  %2374 = vadd.xlane.f32.xlu0 %v2368_v4  ;;  %v3565_v11 = vld [vmem:[%s4218_s24] sm:$0xff]  }
 0xcac   : > { %v2369_v6 = vmul.f32 %v4515_v5, %v4515_v5  ;;  %3390 = vmatpush3.bf16.msra.mxu1 %v3564_v43 }
 0xcad   : > { %3391 = vmatprep.subr.bf16.mxu1 %v3565_v11 }
 0xcae   : > { %2376 = vadd.xlane.f32.xlu1 %v2369_v6 }
 0xcb0   : > { %3392 = vmatpush3.bf16.msra.mxu1 %v3565_v11 }
 0xd2f   : > { %v2371_v24 = vpop.xlane.xlu0 %2370 }
 0xd30   : > { %v2378_v25 = vmul.f32 0.0078125, %v2371_v24 }
 0xd32   : > { %v2382_v26 = vadd.f32 1e-05, %v2378_v25 }
 0xd33   : > { %v2373_v28 = vpop.xlane.xlu1 %2372  ;;  %v2375_v30 = vpop.xlane.xlu0 %2374 }
 0xd34   : > { %3630 = vrsqrt.f32 %v2382_v26  ;;  %v2379_v31 = vmul.f32 0.0078125, %v2373_v28  ;;  %v2380_v33 = vmul.f32 0.0078125, %v2375_v30 }
 0xd36   : > { %v2383_v27 = vadd.f32 1e-05, %v2379_v31  ;;  %v2384_v34 = vadd.f32 1e-05, %v2380_v33 }
 0xd37   : > { %v2377_v35 = vpop.xlane.xlu1 %2376 }
 0xd38   : > { %3632 = vrsqrt.f32 %v2383_v27  ;;  %v2381_v36 = vmul.f32 0.0078125, %v2377_v35 }
 0xd39   : > { %3634 = vrsqrt.f32 %v2384_v34 }
 0xd3a   : > { %v2385_v37 = vadd.f32 1e-05, %v2381_v36 }
 0xd3c   : > { %3636 = vrsqrt.f32 %v2385_v37 }
 0xd41   : > { %v3631_v38 = vpop.eup %3630 }
 0xd42   : > { %v2390_v39 = vmul.f32 %v3631_v38, %v4503_v62  ;;  %v3119_v62 = vld [vmem:[%s783_s25] ss:$0 sm:$0xff] }
 0xd44   : > { %v2400_v45 = vmul.f32 %v3117_v42, %v2390_v39 }
 0xd45   : > { %v3633_v29 = vpop.eup %3632 }
 0xd46   : > { %v3635_v32 = vpop.eup %3634  ;;  %v2391_v44 = vmul.f32 %v3633_v29, %v4507_v1  ;;  %v2410_v50 = vadd.f32 %v3118_v46, %v2400_v45 }
 0xd47   : > { %v2392_v47 = vmul.f32 %v3635_v32, %v4509_v52 }
 0xd48   : > { %v2401_v48 = vmul.f32 %v3117_v42, %v2391_v44 }
 0xd49   : > { %v3637_v49 = vpop.eup %3636  ;;  %v2402_v55 = vmul.f32 %v3117_v42, %v2392_v47 }
 0xd4a   : > { %v2411_v53 = vadd.f32 %v3118_v46, %v2401_v48  ;;  %v2393_v54 = vmul.f32 %v3637_v49, %v4515_v5 }
 0xd4b   : > { %v2412_v58 = vadd.f32 %v3118_v46, %v2402_v55 }
 0xd4c   : > { %v2414_v57 = vpack.c.bf16 %v2411_v53, %v2410_v50  ;;  %v2403_v41 = vmul.f32 %v3117_v42, %v2393_v54 }
 0xd4e   : > { %3373 = vmatprep.mubr.bf16.mxu0 %v2414_v57  ;;  %v2413_v59 = vadd.f32 %v3118_v46, %v2403_v41  ;;  %v3137_v41 = vld [vmem:[%s789_s12] ss:$0 sm:$0xff]  ;;  %s4681_s12 = sld [smem:[#allocation40_spill]] (!%p3139_p11) }
 0xd50   : > { %v2415_v60 = vpack.c.bf16 %v2413_v59, %v2412_v58 }
 0xd52   : > { %3374 = vmatmul.mubr.bf16.vlgmr.msra.gmra.mxu0 %v2415_v60 }
 0xe12   : > { %v3375_v21 = vpop.f32.mrf.mxu0 }
 0xe13   : > { %v2530_v23 = vadd.f32 %v3375_v21, %v3119_v62 }
 0xe14   : > { %v2521_v61 = vpop.f32.mrf.mxu0 }
 0xe15   : > { %v2522_v63 = vadd.f32 %v3119_v62, %v2521_v61  ;;  %v2538_v3 = vmax.f32 %v2530_v23, 0.0 }
 0xe16   : > { %v3376_v13 = vpop.f32.mrf.mxu0 }
 0xe17   : > { %v2533_v0 = vadd.f32 %v3376_v13, %v3119_v62  ;;  %v2536_v56 = vmax.f32 %v2522_v63, 0.0 }
 0xe18   : > { %v2524_v51 = vpop.f32.mrf.mxu0 }
 0xe19   : > { %v2525_v1 = vadd.f32 %v3119_v62, %v2524_v51  ;;  %v2539_v52 = vmax.f32 %v2533_v0, 0.0 }
 0xe1b   : > { %v2537_v2 = vmax.f32 %v2525_v1, 0.0  ;;  %v2541_v5 = vpack.c.bf16 %v2539_v52, %v2538_v3 }
 0xe1d   : > { %v2540_v4 = vpack.c.bf16 %v2537_v2, %v2536_v56 }
 0xe1f   : > { %3393 = vmatprep.mubr.bf16.mxu1 %v2540_v4 }
 0xe20   : > { %3394 = vmatmul.mubr.bf16.vlgmr.msra.gmra.mxu1 %v2541_v5 }
 0xee0   : > { %v3395_v6 = vpop.f32.mrf.mxu1 }
 0xee1   : > { %v2656_v12 = vadd.f32 %v3395_v6, %v3128_v7 }
 0xee2   : > { %v2647_v8 = vpop.f32.mrf.mxu1 }
 0xee3   : > { %v2648_v9 = vadd.f32 %v3128_v7, %v2647_v8  ;;  %v2664_v19 = vadd.f32 %v2656_v12, %v2412_v58 }
 0xee4   : > { %v3396_v10 = vpop.f32.mrf.mxu1 }
 0xee5   : > { %v2662_v14 = vadd.f32 %v2648_v9, %v2410_v50  ;;  %v2659_v17 = vadd.f32 %v3396_v10, %v3128_v7 }
 0xee6   : > { %v2650_v15 = vpop.f32.mrf.mxu1 }
 0xee7   : > { %v2651_v16 = vadd.f32 %v3128_v7, %v2650_v15  ;;  %2668 = vadd.xlane.f32.xlu0 %v2662_v14  ;;  %v2665_v20 = vadd.f32 %v2659_v17, %v2413_v59  ;;  %v3138_v59 = vld [vmem:[%s792_s18] ss:$0 sm:$0xff] }
 0xee9   : > { %v2663_v18 = vadd.f32 %v2651_v16, %v2411_v53 }
 0xeeb   : > { %2670 = vadd.xlane.f32.xlu1 %v2663_v18  ;;  %2672 = vadd.xlane.f32.xlu0 %v2664_v19 }
 0xeef   : > { %2674 = vadd.xlane.f32.xlu1 %v2665_v20 }
 0xf70   : > { %v2669_v22 = vpop.xlane.xlu0 %2668 }
 0xf71   : > { %v2676_v24 = vmul.f32 0.0078125, %v2669_v22 }
 0xf73   : > { %v2680_v25 = vsub.f32 %v2662_v14, %v2676_v24 }
 0xf74   : > { %v2671_v26 = vpop.xlane.xlu1 %2670  ;;  %v2673_v28 = vpop.xlane.xlu0 %2672 }
 0xf75   : > { %v2677_v30 = vmul.f32 0.0078125, %v2671_v26  ;;  %v2678_v31 = vmul.f32 0.0078125, %v2673_v28  ;;  %v2684_v33 = vmul.f32 %v2680_v25, %v2680_v25 }
 0xf77   : > { %v2681_v27 = vsub.f32 %v2663_v18, %v2677_v30  ;;  %v2682_v34 = vsub.f32 %v2664_v19, %v2678_v31  ;;  %2688 = vadd.xlane.f32.xlu0 %v2684_v33 }
 0xf78   : > { %v2675_v35 = vpop.xlane.xlu1 %2674 }
 0xf79   : > { %v2679_v36 = vmul.f32 0.0078125, %v2675_v35  ;;  %v2685_v37 = vmul.f32 %v2681_v27, %v2681_v27  ;;  %v2686_v38 = vmul.f32 %v2682_v34, %v2682_v34 }
 0xf7b   : > { %v2683_v39 = vsub.f32 %v2665_v20, %v2679_v36  ;;  %2690 = vadd.xlane.f32.xlu1 %v2685_v37  ;;  %2692 = vadd.xlane.f32.xlu0 %v2686_v38 }
 0xf7d   : > { %v2687_v42 = vmul.f32 %v2683_v39, %v2683_v39 }
 0xf7f   : > { %2694 = vadd.xlane.f32.xlu1 %v2687_v42 }
0x1000   : > { %v2689_v29 = vpop.xlane.xlu0 %2688 }
0x1001   : > { %v2696_v32 = vmul.f32 0.0078125, %v2689_v29 }
0x1003   : > { %v2700_v44 = vadd.f32 1e-05, %v2696_v32 }
0x1004   : > { %v2691_v45 = vpop.xlane.xlu1 %2690  ;;  %v2693_v46 = vpop.xlane.xlu0 %2692 }
0x1005   : > { %3638 = vrsqrt.f32 %v2700_v44  ;;  %v2697_v47 = vmul.f32 0.0078125, %v2691_v45  ;;  %v2698_v48 = vmul.f32 0.0078125, %v2693_v46 }
0x1007   : > { %v2701_v49 = vadd.f32 1e-05, %v2697_v47  ;;  %v2702_v50 = vadd.f32 1e-05, %v2698_v48 }
0x1008   : > { %v2695_v53 = vpop.xlane.xlu1 %2694 }
0x1009   : > { %3640 = vrsqrt.f32 %v2701_v49  ;;  %v2699_v54 = vmul.f32 0.0078125, %v2695_v53 }
0x100a   : > { %3642 = vrsqrt.f32 %v2702_v50 }
0x100b   : > { %v2703_v55 = vadd.f32 1e-05, %v2699_v54 }
0x100d   : > { %3644 = vrsqrt.f32 %v2703_v55 }
0x1012   : > { %v3639_v57 = vpop.eup %3638 }
0x1013   : > { %v2708_v58 = vmul.f32 %v3639_v57, %v2680_v25 }
0x1015   : > { %v2718_v60 = vmul.f32 %v3137_v41, %v2708_v58 }
0x1016   : > { %v3641_v40 = vpop.eup %3640 }
0x1017   : > { %v3643_v43 = vpop.eup %3642  ;;  %v2728_v11 = vadd.f32 %v3138_v59, %v2718_v60  ;;  %v2709_v21 = vmul.f32 %v3641_v40, %v2681_v27 }
0x1018   : > { %v2710_v61 = vmul.f32 %v3643_v43, %v2682_v34 }
0x1019   : > { %2732 = vst [vmem:[#allocation2 + $0x10] sm:$0xff] %v2728_v11  ;;  %v2719_v62 = vmul.f32 %v3137_v41, %v2709_v21 }
0x101a   : > { %v3645_v13 = vpop.eup %3644  ;;  %v2720_v63 = vmul.f32 %v3137_v41, %v2710_v61 }
0x101b   : > { %v2729_v0 = vadd.f32 %v3138_v59, %v2719_v62  ;;  %v2711_v23 = vmul.f32 %v3645_v13, %v2683_v39 }
0x101c   : > { %v2730_v51 = vadd.f32 %v3138_v59, %v2720_v63 }
0x101d   : > { %2733 = vst [vmem:[#allocation2] sm:$0xff] %v2729_v0  ;;  %v2721_v1 = vmul.f32 %v3137_v41, %v2711_v23  ;;  %2739 = sbr.rel (%p3139_p11) target bundleno = 4445 (0x115d), region = 112 }
0x101e   : > { %2734 = vst [vmem:[#allocation2 + $0x18] sm:$0xff] %v2730_v51 }
0x101f   : > { %v2731_v52 = vadd.f32 %v3138_v59, %v2721_v1 }
0x1021   : > { %2735 = vst [vmem:[#allocation2 + $0x8] sm:$0xff] %v2731_v52 }
0x1022   : > { %2742 = vadd.xlane.f32.xlu0 %v2728_v11  ;;  %2746 = vadd.xlane.f32.xlu1 %v2730_v51  ;;  %v3140_v36 = vld [vmem:[%s4681_s12] ss:$0 sm:$0xff] }
0x1023   : > { %v3141_v38 = vld [vmem:[%s4682_s0] ss:$0 sm:$0xff] }
0x1026   : > { %2744 = vadd.xlane.f32.xlu0 %v2729_v0  ;;  %2748 = vadd.xlane.f32.xlu1 %v2731_v52 }
0x10ab   : > { %v2743_v56 = vpop.xlane.xlu0 %2742  ;;  %v2747_v2 = vpop.xlane.xlu1 %2746 }
0x10ac   : > { %v2750_v3 = vmul.f32 0.0078125, %v2743_v56  ;;  %v2752_v4 = vmul.f32 0.0078125, %v2747_v2 }
0x10ae   : > { %v2754_v5 = vsub.f32 %v2728_v11, %v2750_v3  ;;  %v2756_v6 = vsub.f32 %v2730_v51, %v2752_v4 }
0x10af   : > { %v2745_v7 = vpop.xlane.xlu0 %2744  ;;  %v2749_v8 = vpop.xlane.xlu1 %2748 }
0x10b0   : > { %v2751_v9 = vmul.f32 0.0078125, %v2745_v7  ;;  %v2758_v10 = vmul.f32 %v2754_v5, %v2754_v5  ;;  %v2753_v12 = vmul.f32 0.0078125, %v2749_v8  ;;  %v2760_v16 = vmul.f32 %v2756_v6, %v2756_v6 }
0x10b2   : > { %v2755_v14 = vsub.f32 %v2729_v0, %v2751_v9  ;;  %2762 = vadd.xlane.f32.xlu0 %v2758_v10  ;;  %v2757_v15 = vsub.f32 %v2731_v52, %v2753_v12 }
0x10b4   : > { %v2759_v17 = vmul.f32 %v2755_v14, %v2755_v14  ;;  %v2761_v18 = vmul.f32 %v2757_v15, %v2757_v15 }
0x10b6   : > { %2766 = vadd.xlane.f32.xlu0 %v2760_v16  ;;  %2764 = vadd.xlane.f32.xlu1 %v2759_v17 }
0x10ba   : > { %2768 = vadd.xlane.f32.xlu1 %v2761_v18 }
0x113b   : > { %v2763_v19 = vpop.xlane.xlu0 %2762 }
0x113c   : > { %v2770_v20 = vmul.f32 0.0078125, %v2763_v19 }
0x113e   : > { %v2774_v22 = vadd.f32 1e-05, %v2770_v20 }
0x113f   : > { %v2765_v24 = vpop.xlane.xlu1 %2764  ;;  %v2767_v25 = vpop.xlane.xlu0 %2766 }
0x1140   : > { %3650 = vrsqrt.f32 %v2774_v22  ;;  %v2771_v26 = vmul.f32 0.0078125, %v2765_v24  ;;  %v2772_v28 = vmul.f32 0.0078125, %v2767_v25 }
0x1142   : > { %v2775_v30 = vadd.f32 1e-05, %v2771_v26  ;;  %v2776_v31 = vadd.f32 1e-05, %v2772_v28 }
0x1143   : > { %v2769_v33 = vpop.xlane.xlu1 %2768 }
0x1144   : > { %3652 = vrsqrt.f32 %v2775_v30  ;;  %v2773_v27 = vmul.f32 0.0078125, %v2769_v33 }
0x1145   : > { %3654 = vrsqrt.f32 %v2776_v31 }
0x1146   : > { %v2777_v34 = vadd.f32 1e-05, %v2773_v27 }
0x1148   : > { %3656 = vrsqrt.f32 %v2777_v34 }
0x114d   : > { %v3651_v35 = vpop.eup %3650 }
0x114e   : > { %v2782_v37 = vmul.f32 %v3651_v35, %v2754_v5 }
0x1150   : > { %v2792_v39 = vmul.f32 %v3140_v36, %v2782_v37 }
0x1151   : > { %v3653_v42 = vpop.eup %3652 }
0x1152   : > { %v3655_v29 = vpop.eup %3654  ;;  %v2802_v32 = vadd.f32 %v3141_v38, %v2792_v39  ;;  %v2783_v44 = vmul.f32 %v3653_v42, %v2755_v14 }
0x1153   : > { %v2784_v45 = vmul.f32 %v3655_v29, %v2756_v6 }
0x1154   : > { %2806 = vst [vmem:[#allocation16] sm:$0xff] %v2802_v32  ;;  %v2793_v46 = vmul.f32 %v3140_v36, %v2783_v44 }
0x1155   : > { %v3657_v47 = vpop.eup %3656  ;;  %v2794_v48 = vmul.f32 %v3140_v36, %v2784_v45 }
0x1156   : > { %v2803_v49 = vadd.f32 %v3141_v38, %v2793_v46  ;;  %v2785_v50 = vmul.f32 %v3657_v47, %v2757_v15 }
0x1157   : > { %v2804_v53 = vadd.f32 %v3141_v38, %v2794_v48 }
0x1158   : > { %2807 = vst [vmem:[#allocation16 + $0x8] sm:$0xff] %v2803_v49  ;;  %v2795_v54 = vmul.f32 %v3140_v36, %v2785_v50 }
0x1159   : > { %2808 = vst [vmem:[#allocation16 + $0x10] sm:$0xff] %v2804_v53 }
0x115a   : > { %v2805_v55 = vadd.f32 %v3141_v38, %v2795_v54 }
0x115c   : > { %2809 = vst [vmem:[#allocation16 + $0x18] sm:$0xff] %v2805_v55 }
0x115d PF: > { %p3444_p0 = scmp.eq.s32.totalorder %s4112_s8, 1  ;;  %s3934_s7 = smov [#allocation16]  }
0x115e   : > { %s2820_s9 = sshll.u32 %s3934_s7, 4  ;;  %s2821_s9 = int_to_ptr.vmem [resolvable:$true] %s2820_s9 }
0x115f   : > { %s3824_s19 = scalar_lea.vmem %s2821_s9, 512  ;;  %p3831_p12 = scmp.lt.s32.totalorder %s2821_s9, %s2821_s9 }
0x1160   : > { %p3825_p1 = scmp.ne.s32.totalorder %s2821_s9, %s3824_s19  ;;  %p3832_p3 = scmp.lt.s32.totalorder %s3824_s19, %s3824_s19 }
0x1162   : > { %p3826_p9 = pnand %p3825_p1, %p3444_p0  ;;  %p3833_p13 = por %p3832_p3, %p3831_p12 }
0x1164   : > { %p3827_p10 = pneg %p3826_p9 }
0x1166   : > { %p3834_p2 = pnand %p3833_p13, %p3827_p10 }
0x1168   : > { %3837 = shalt.err (!%p3834_p2)
}
0x1169   : > { %s3935_s28 = smov 128   ;;  %s3936_s30 = smov 8  }
0x116a   : > { %s4683_s11 = sld [smem:[#allocation42_spill]] }
0x1170   : > { %3418 = dma.vmem_to_hbm [thread:$0]  (%p3444_p0), %s2821_s9, 512, %s4683_s11, [#allocation7], %s3935_s28, %s3935_s28, %s3936_s30  }
0x1171   : > { %3889 = dma.done.wait (%p3444_p0), [#allocation7], 512  }
0x1172   : > { %3891 = vsyncadd (%p3444_p0), [#allocation7], 4294966784 }
0x1173 PF: > { %s4684_s6 = sld [smem:[#allocation25_spill]] }
0x1174   : > { %s4685_s18 = sld [smem:[#allocation22_spill]] }
0x1175   : > { %s4686_s19 = sld [smem:[#allocation23_spill]] }
0x1176   : > { %s4687_s20 = sld [smem:[#allocation27_spill]] }
0x1177   : > { %s4688_s21 = sld [smem:[#allocation24_spill]] }
0x1178   : > { %s4689_s22 = sld [smem:[#allocation26_spill]] }
0x1179   : > { %s36_s23 = sadd.s32 1, %s4684_s6  }
0x117a   : > { %p33_p4 = scmp.ge.s32.totalorder %s36_s23, 4  }
0x117c   :  { %35 = sbr.rel (!%p33_p4) target bundleno = 26 (0x1a), region = 201 }
0x1181   :  { %2836 = vsyncpa [#allocation6], 1 }
0x1182   :  { %2838 = vsyncpa [#allocation6 + $0x1], 1 }
0x1183   :  { %2839 = vsyncpa [#allocation9], 1 }
0x1184   :  { %2841 = vsyncpa [#allocation9 + $0x1], 1 }
0x1185   :  { %2842 = vsyncpa [#allocation12], 1 }
0x1186   :  { %2844 = vsyncpa [#allocation12 + $0x1], 1 }
0x1187   :  { %2845 = vsyncpa [#allocation15], 1 }
0x1188   :  { %2847 = vsyncpa [#allocation15 + $0x1], 1 }
0x1189   :  { %2848 = vsyncpa [#allocation7], 1 }
0x118a   :  { %2850 = vsyncpa [#allocation7 + $0x1], 1 }

</bundles_post_ra>
